<compile_context>
chip_gen: v7x
topology: tpu7x:2x2x1
jax: 0.10.0
libtpu: 0.0.40
codegen_flags: <defaults>
</compile_context>

<pallas_src>
import math

import jax
import jax.numpy as jnp
from jax.experimental import pallas as pl
from jax.experimental.pallas import tpu as pltpu


# ---------------- model hyper-parameters (small, consistent with module) ----
B = 2            # batch
S = 8            # sequence length
E = 32           # emd_dim
H = 64           # ffn_hidden_size
NUM_HEAD = 4
DK = E // NUM_HEAD
L = 2            # num_layer
EPS = 1e-6
BS = B * S


def _layernorm(v, gain, bias):
    # torch: gain * (x - mean) / (std + eps) + bias, std is unbiased (ddof=1)
    mean = jnp.mean(v, axis=-1, keepdims=True)
    diff = v - mean
    var = jnp.sum(diff * diff, axis=-1, keepdims=True) / (E - 1)
    std = jnp.sqrt(var)
    return gain * diff / (std + EPS) + bias


def encoder_kernel(
    x_ref,        # (BS, E)
    wqkv_ref,     # (L, E, 3E)   fused [Wq | Wk | Wv]
    wo_ref,       # (L, E, E)
    wf1_ref,      # (L, E, H)
    wf2_ref,      # (L, H, E)
    vec_ref,      # (L, 8, 3E)   rows: bqkv | ob | g1 | b1 | f1b | f2b | g2 | b2
    lnf_ref,      # (2, E)       final LayerNorm gain / bias
    o_ref,        # (BS, E)
    attn_scr,     # VMEM scratch (BS, E) f32
):
    x = x_ref[...].astype(jnp.float32)                      # (BS, E)
    scale = 1.0 / math.sqrt(float(DK))

    for l in range(L):                                      # static unroll over layers
        vl = vec_ref[l]                                     # (8, 3E)
        bqkv = vl[0:1, :]                                   # (1, 3E)
        ob = vl[1:2, 0:E]
        g1 = vl[2:3, 0:E]
        b1 = vl[3:4, 0:E]
        f1b = vl[4:5, 0:H]
        f2b = vl[5:6, 0:E]
        g2 = vl[6:7, 0:E]
        b2 = vl[7:8, 0:E]

        # ---- fused QKV projection: one matmul over all B*S rows ----
        qkv = jnp.dot(x, wqkv_ref[l], preferred_element_type=jnp.float32) + bqkv  # (BS, 3E)

        # ---- per-(batch, head) scaled dot-product attention ----
        # head outputs are stored into a VMEM scratch at static offsets
        # (no lane-wise concatenate).
        for b in range(B):
            qkv_b = qkv[b * S:(b + 1) * S, :]               # (S, 3E)
            for h in range(NUM_HEAD):
                lo = h * DK
                qh = qkv_b[:, lo:lo + DK]                   # (S, DK)
                kh = qkv_b[:, E + lo:E + lo + DK]
                vh = qkv_b[:, 2 * E + lo:2 * E + lo + DK]
                s = jnp.dot(qh, kh.T, preferred_element_type=jnp.float32) * scale
                s = s - jnp.max(s, axis=-1, keepdims=True)
                p = jnp.exp(s)
                p = p * pl.reciprocal(jnp.sum(p, axis=-1, keepdims=True), approx=True)
                oh = jnp.dot(p, vh, preferred_element_type=jnp.float32)   # (S, DK)
                attn_scr[b * S:(b + 1) * S, lo:lo + DK] = oh

        attn = attn_scr[...]                                # (BS, E)

        # ---- output projection ----
        attn = jnp.dot(attn, wo_ref[l], preferred_element_type=jnp.float32) + ob

        # ---- residual + LayerNorm 1 ----
        h1 = _layernorm(x + attn, g1, b1)

        # ---- feed-forward (dropout == identity at inference) ----
        ff = jnp.dot(h1, wf1_ref[l], preferred_element_type=jnp.float32) + f1b
        ff = jnp.maximum(ff, 0.0)
        ff = jnp.dot(ff, wf2_ref[l], preferred_element_type=jnp.float32) + f2b

        # ---- residual + LayerNorm 2 ----
        x = _layernorm(h1 + ff, g2, b2)

    # ---- final LayerNorm of the Encoder ----
    out = _layernorm(x, lnf_ref[0:1, :], lnf_ref[1:2, :])
    o_ref[...] = out.astype(o_ref.dtype)


def encoder_forward(x, params):
    """x: (B, S, E) float32. Returns (B, S, E)."""
    x2d = x.reshape(BS, E)
    args = [
        x2d,
        params["wqkv"], params["wo"], params["wf1"], params["wf2"],
        params["vecs"], params["lnf"],
    ]

    in_specs = [
        pl.BlockSpec(a.shape, lambda i, _nd=a.ndim: (0,) * _nd) for a in args
    ]
    out_spec = pl.BlockSpec((BS, E), lambda i: (0, 0))

    out2d = pl.pallas_call(
        encoder_kernel,
        out_shape=jax.ShapeDtypeStruct((BS, E), x.dtype),
        grid_spec=pltpu.PrefetchScalarGridSpec(
            num_scalar_prefetch=0,
            grid=(1,),
            in_specs=in_specs,
            out_specs=out_spec,
            scratch_shapes=[pltpu.VMEM((BS, E), jnp.float32)],
        ),
        compiler_params=pltpu.CompilerParams(
            dimension_semantics=("arbitrary",),
        ),
    )(*args)
    return out2d.reshape(B, S, E)


def init_params(key):
    keys = jax.random.split(key, L + 1)

    def lin(k, fan_in, shape):
        bound = 1.0 / math.sqrt(fan_in)
        return jax.random.uniform(k, shape, jnp.float32, -bound, bound)

    def pad_to(v, w):
        return jnp.pad(v, (0, w - v.shape[0]))

    wqkv_l, wo_l, wf1_l, wf2_l, vecs_l, layers = [], [], [], [], [], []
    for l in range(L):
        ks = jax.random.split(keys[l], 16)
        qw = lin(ks[0], E, (E, E)); qb = lin(ks[1], E, (E,))
        kw = lin(ks[2], E, (E, E)); kb = lin(ks[3], E, (E,))
        vw = lin(ks[4], E, (E, E)); vb = lin(ks[5], E, (E,))
        ow = lin(ks[6], E, (E, E)); ob = lin(ks[7], E, (E,))
        f1w = lin(ks[8], E, (E, H)); f1b = lin(ks[9], E, (H,))
        f2w = lin(ks[10], H, (H, E)); f2b = lin(ks[11], H, (E,))
        g1 = 1.0 + 0.1 * jax.random.normal(ks[12], (E,), jnp.float32)
        b1 = 0.1 * jax.random.normal(ks[13], (E,), jnp.float32)
        g2 = 1.0 + 0.1 * jax.random.normal(ks[14], (E,), jnp.float32)
        b2 = 0.1 * jax.random.normal(ks[15], (E,), jnp.float32)

        wqkv_l.append(jnp.concatenate([qw, kw, vw], axis=1))       # (E, 3E)
        wo_l.append(ow)
        wf1_l.append(f1w)
        wf2_l.append(f2w)
        bqkv = jnp.concatenate([qb, kb, vb])                       # (3E,)
        vecs_l.append(jnp.stack([
            bqkv,
            pad_to(ob, 3 * E), pad_to(g1, 3 * E), pad_to(b1, 3 * E),
            pad_to(f1b, 3 * E), pad_to(f2b, 3 * E),
            pad_to(g2, 3 * E), pad_to(b2, 3 * E),
        ]))                                                         # (8, 3E)
        layers.append(dict(qw=qw, qb=qb, kw=kw, kb=kb, vw=vw, vb=vb, ow=ow, ob=ob,
                           g1=g1, b1=b1, f1w=f1w, f1b=f1b, f2w=f2w, f2b=f2b,
                           g2=g2, b2=b2))

    kf1, kf2 = jax.random.split(keys[L])
    gf = 1.0 + 0.1 * jax.random.normal(kf1, (E,), jnp.float32)
    bf = 0.1 * jax.random.normal(kf2, (E,), jnp.float32)

    return dict(
        wqkv=jnp.stack(wqkv_l), wo=jnp.stack(wo_l),
        wf1=jnp.stack(wf1_l), wf2=jnp.stack(wf2_l),
        vecs=jnp.stack(vecs_l), lnf=jnp.stack([gf, bf]),
        layers=layers,   # unpacked copies, used only by the pure-JAX reference
    )


def _reference(x, params):
    """Pure-JAX reference of the Encoder forward (sanity check)."""
    def ln(v, g, b):
        mean = jnp.mean(v, axis=-1, keepdims=True)
        diff = v - mean
        std = jnp.sqrt(jnp.sum(diff * diff, axis=-1, keepdims=True) / (E - 1))
        return g * diff / (std + EPS) + b

    for lp in params["layers"]:
        q = x @ lp["qw"] + lp["qb"]
        k = x @ lp["kw"] + lp["kb"]
        v = x @ lp["vw"] + lp["vb"]
        qh = q.reshape(B, S, NUM_HEAD, DK).transpose(0, 2, 1, 3)
        kh = k.reshape(B, S, NUM_HEAD, DK).transpose(0, 2, 1, 3)
        vh = v.reshape(B, S, NUM_HEAD, DK).transpose(0, 2, 1, 3)
        scores = jnp.einsum("bhqd,bhkd->bhqk", qh, kh) / math.sqrt(DK)
        p_attn = jax.nn.softmax(scores, axis=-1)
        a = jnp.einsum("bhqk,bhkd->bhqd", p_attn, vh)
        a = a.transpose(0, 2, 1, 3).reshape(B, S, E)
        a = a @ lp["ow"] + lp["ob"]
        h1 = ln(x + a, lp["g1"], lp["b1"])
        ff = jnp.maximum(h1 @ lp["f1w"] + lp["f1b"], 0.0) @ lp["f2w"] + lp["f2b"]
        x = ln(h1 + ff, lp["g2"], lp["b2"])
    return ln(x, params["lnf"][0], params["lnf"][1])


if __name__ == "__main__":
    key = jax.random.PRNGKey(0)
    kx, kp = jax.random.split(key)
    x = jax.random.normal(kx, (B, S, E), jnp.float32)
    params = init_params(kp)

    out = jax.block_until_ready(encoder_forward(x, params))
    ref = _reference(x, params)

    assert out.shape == (B, S, E)
    # tolerance allows for the intentionally-approximate EUP reciprocal in softmax
    err = float(jnp.max(jnp.abs(out - ref)))
    assert jnp.allclose(out, ref, atol=2e-3, rtol=2e-3), f"max abs err {err}"
    print("KERNEL_OK")
</pallas_src>

<mosaic_0001>
module attributes {stable_mosaic.version = 11 : i64} {
  func.func @encoder_kernel(%arg0: i32, %arg1: memref<16x32xf32, #tpu.memory_space<vmem>>, %arg2: memref<2x32x96xf32, #tpu.memory_space<vmem>>, %arg3: memref<2x32x32xf32, #tpu.memory_space<vmem>>, %arg4: memref<2x32x64xf32, #tpu.memory_space<vmem>>, %arg5: memref<2x64x32xf32, #tpu.memory_space<vmem>>, %arg6: memref<2x8x96xf32, #tpu.memory_space<vmem>>, %arg7: memref<2x32xf32, #tpu.memory_space<vmem>>, %arg8: memref<16x32xf32, #tpu.memory_space<vmem>>, %arg9: memref<16x32xf32, #tpu.memory_space<vmem>>) attributes {dimension_semantics = [#tpu.dimension_semantics<arbitrary>], iteration_bounds = array<i64: 1>, scalar_prefetch = 0 : i64, scratch_operands = 1 : i64, tpu.core_type = #tpu.core_type<tc>, window_params = [{pipeline_mode = #tpu.pipeline_mode<synchronous>, transform_indices = @transform_0, window_bounds = array<i64: 16, 32>}, {pipeline_mode = #tpu.pipeline_mode<synchronous>, transform_indices = @transform_1, window_bounds = array<i64: 2, 32, 96>}, {pipeline_mode = #tpu.pipeline_mode<synchronous>, transform_indices = @transform_2, window_bounds = array<i64: 2, 32, 32>}, {pipeline_mode = #tpu.pipeline_mode<synchronous>, transform_indices = @transform_3, window_bounds = array<i64: 2, 32, 64>}, {pipeline_mode = #tpu.pipeline_mode<synchronous>, transform_indices = @transform_4, window_bounds = array<i64: 2, 64, 32>}, {pipeline_mode = #tpu.pipeline_mode<synchronous>, transform_indices = @transform_5, window_bounds = array<i64: 2, 8, 96>}, {pipeline_mode = #tpu.pipeline_mode<synchronous>, transform_indices = @transform_6, window_bounds = array<i64: 2, 32>}, {pipeline_mode = #tpu.pipeline_mode<synchronous>, transform_indices = @transform_7, window_bounds = array<i64: 16, 32>}]} {
    %c0 = arith.constant 0 : index
    %c0_0 = arith.constant 0 : index
    %0 = vector.load %arg1[%c0, %c0_0] : memref<16x32xf32, #tpu.memory_space<vmem>>, vector<16x32xf32>
    %c0_1 = arith.constant 0 : index
    %c0_2 = arith.constant 0 : index
    %c0_3 = arith.constant 0 : index
    %1 = vector.load %arg6[%c0_1, %c0_2, %c0_3] : memref<2x8x96xf32, #tpu.memory_space<vmem>>, vector<1x8x96xf32>
    %2 = vector.shape_cast %1 : vector<1x8x96xf32> to vector<8x96xf32>
    %3 = vector.extract_strided_slice %2 {offsets = [0, 0], sizes = [1, 96], strides = [1, 1]} : vector<8x96xf32> to vector<1x96xf32>
    %4 = vector.extract_strided_slice %2 {offsets = [1, 0], sizes = [1, 32], strides = [1, 1]} : vector<8x96xf32> to vector<1x32xf32>
    %5 = vector.extract_strided_slice %2 {offsets = [2, 0], sizes = [1, 32], strides = [1, 1]} : vector<8x96xf32> to vector<1x32xf32>
    %6 = vector.extract_strided_slice %2 {offsets = [3, 0], sizes = [1, 32], strides = [1, 1]} : vector<8x96xf32> to vector<1x32xf32>
    %7 = vector.extract_strided_slice %2 {offsets = [4, 0], sizes = [1, 64], strides = [1, 1]} : vector<8x96xf32> to vector<1x64xf32>
    %8 = vector.extract_strided_slice %2 {offsets = [5, 0], sizes = [1, 32], strides = [1, 1]} : vector<8x96xf32> to vector<1x32xf32>
    %9 = vector.extract_strided_slice %2 {offsets = [6, 0], sizes = [1, 32], strides = [1, 1]} : vector<8x96xf32> to vector<1x32xf32>
    %10 = vector.extract_strided_slice %2 {offsets = [7, 0], sizes = [1, 32], strides = [1, 1]} : vector<8x96xf32> to vector<1x32xf32>
    %c0_4 = arith.constant 0 : index
    %c0_5 = arith.constant 0 : index
    %c0_6 = arith.constant 0 : index
    %11 = vector.load %arg2[%c0_4, %c0_5, %c0_6] : memref<2x32x96xf32, #tpu.memory_space<vmem>>, vector<1x32x96xf32>
    %12 = vector.shape_cast %11 : vector<1x32x96xf32> to vector<32x96xf32>
    %cst = arith.constant dense<0.000000e+00> : vector<16x96xf32>
    %13 = tpu.matmul %0, %12, %cst {dimension_numbers = #tpu.dot_dimension_numbers<[1], [0], [0], [1], [0, 0, 1, 1], [], []>} : vector<16x32xf32>, vector<32x96xf32>, vector<16x96xf32> -> vector<16x96xf32>
    %14 = vector.broadcast %3 : vector<1x96xf32> to vector<16x96xf32>
    %15 = arith.addf %13, %14 : vector<16x96xf32>
    %16 = vector.extract_strided_slice %15 {offsets = [0, 0], sizes = [8, 96], strides = [1, 1]} : vector<16x96xf32> to vector<8x96xf32>
    %17 = vector.extract_strided_slice %16 {offsets = [0, 0], sizes = [8, 8], strides = [1, 1]} : vector<8x96xf32> to vector<8x8xf32>
    %18 = vector.extract_strided_slice %16 {offsets = [0, 32], sizes = [8, 8], strides = [1, 1]} : vector<8x96xf32> to vector<8x8xf32>
    %19 = vector.extract_strided_slice %16 {offsets = [0, 64], sizes = [8, 8], strides = [1, 1]} : vector<8x96xf32> to vector<8x8xf32>
    %20 = tpu.transpose %18, [1, 0] : vector<8x8xf32> -> vector<8x8xf32>
    %cst_7 = arith.constant dense<0.000000e+00> : vector<8x8xf32>
    %21 = tpu.matmul %17, %20, %cst_7 {dimension_numbers = #tpu.dot_dimension_numbers<[1], [0], [0], [1], [0, 0, 1, 1], [], []>} : vector<8x8xf32>, vector<8x8xf32>, vector<8x8xf32> -> vector<8x8xf32>
    %cst_8 = arith.constant 0.353553385 : f32
    %22 = vector.broadcast %cst_8 : f32 to vector<8x8xf32>
    %23 = arith.mulf %21, %22 : vector<8x8xf32>
    %cst_9 = arith.constant dense<0xFF800000> : vector<8xf32>
    %24 = vector.multi_reduction <maximumf>, %23, %cst_9 [1] : vector<8x8xf32> to vector<8xf32>
    %25 = vector.shape_cast %24 : vector<8xf32> to vector<8x1xf32>
    %26 = vector.broadcast %25 : vector<8x1xf32> to vector<8x8xf32>
    %27 = arith.subf %23, %26 : vector<8x8xf32>
    %28 = math.exp %27 : vector<8x8xf32>
    %cst_10 = arith.constant dense<0.000000e+00> : vector<8xf32>
    %29 = vector.multi_reduction <add>, %28, %cst_10 [1] : vector<8x8xf32> to vector<8xf32>
    %30 = vector.shape_cast %29 : vector<8xf32> to vector<8x1xf32>
    %31 = tpu.reciprocal %30 {approx = true} : vector<8x1xf32> -> vector<8x1xf32>
    %32 = vector.broadcast %31 : vector<8x1xf32> to vector<8x8xf32>
    %33 = arith.mulf %28, %32 : vector<8x8xf32>
    %cst_11 = arith.constant dense<0.000000e+00> : vector<8x8xf32>
    %34 = tpu.matmul %33, %19, %cst_11 {dimension_numbers = #tpu.dot_dimension_numbers<[1], [0], [0], [1], [0, 0, 1, 1], [], []>} : vector<8x8xf32>, vector<8x8xf32>, vector<8x8xf32> -> vector<8x8xf32>
    %c0_12 = arith.constant 0 : index
    %c0_13 = arith.constant 0 : index
    %35 = vector.load %arg9[%c0_12, %c0_13] : memref<16x32xf32, #tpu.memory_space<vmem>>, vector<8x8xf32>
    tpu.vector_store %arg9[%c0_12, %c0_13], %34 {strides = array<i32>} : memref<16x32xf32, #tpu.memory_space<vmem>>, vector<8x8xf32>,
    %36 = vector.extract_strided_slice %16 {offsets = [0, 8], sizes = [8, 8], strides = [1, 1]} : vector<8x96xf32> to vector<8x8xf32>
    %37 = vector.extract_strided_slice %16 {offsets = [0, 40], sizes = [8, 8], strides = [1, 1]} : vector<8x96xf32> to vector<8x8xf32>
    %38 = vector.extract_strided_slice %16 {offsets = [0, 72], sizes = [8, 8], strides = [1, 1]} : vector<8x96xf32> to vector<8x8xf32>
    %39 = tpu.transpose %37, [1, 0] : vector<8x8xf32> -> vector<8x8xf32>
    %cst_14 = arith.constant dense<0.000000e+00> : vector<8x8xf32>
    %40 = tpu.matmul %36, %39, %cst_14 {dimension_numbers = #tpu.dot_dimension_numbers<[1], [0], [0], [1], [0, 0, 1, 1], [], []>} : vector<8x8xf32>, vector<8x8xf32>, vector<8x8xf32> -> vector<8x8xf32>
    %cst_15 = arith.constant 0.353553385 : f32
    %41 = vector.broadcast %cst_15 : f32 to vector<8x8xf32>
    %42 = arith.mulf %40, %41 : vector<8x8xf32>
    %cst_16 = arith.constant dense<0xFF800000> : vector<8xf32>
    %43 = vector.multi_reduction <maximumf>, %42, %cst_16 [1] : vector<8x8xf32> to vector<8xf32>
    %44 = vector.shape_cast %43 : vector<8xf32> to vector<8x1xf32>
    %45 = vector.broadcast %44 : vector<8x1xf32> to vector<8x8xf32>
    %46 = arith.subf %42, %45 : vector<8x8xf32>
    %47 = math.exp %46 : vector<8x8xf32>
    %cst_17 = arith.constant dense<0.000000e+00> : vector<8xf32>
    %48 = vector.multi_reduction <add>, %47, %cst_17 [1] : vector<8x8xf32> to vector<8xf32>
    %49 = vector.shape_cast %48 : vector<8xf32> to vector<8x1xf32>
    %50 = tpu.reciprocal %49 {approx = true} : vector<8x1xf32> -> vector<8x1xf32>
    %51 = vector.broadcast %50 : vector<8x1xf32> to vector<8x8xf32>
    %52 = arith.mulf %47, %51 : vector<8x8xf32>
    %cst_18 = arith.constant dense<0.000000e+00> : vector<8x8xf32>
    %53 = tpu.matmul %52, %38, %cst_18 {dimension_numbers = #tpu.dot_dimension_numbers<[1], [0], [0], [1], [0, 0, 1, 1], [], []>} : vector<8x8xf32>, vector<8x8xf32>, vector<8x8xf32> -> vector<8x8xf32>
    %c0_19 = arith.constant 0 : index
    %c8 = arith.constant 8 : index
    %54 = vector.load %arg9[%c0_19, %c8] : memref<16x32xf32, #tpu.memory_space<vmem>>, vector<8x8xf32>
    tpu.vector_store %arg9[%c0_19, %c8], %53 {strides = array<i32>} : memref<16x32xf32, #tpu.memory_space<vmem>>, vector<8x8xf32>,
    %55 = vector.extract_strided_slice %16 {offsets = [0, 16], sizes = [8, 8], strides = [1, 1]} : vector<8x96xf32> to vector<8x8xf32>
    %56 = vector.extract_strided_slice %16 {offsets = [0, 48], sizes = [8, 8], strides = [1, 1]} : vector<8x96xf32> to vector<8x8xf32>
    %57 = vector.extract_strided_slice %16 {offsets = [0, 80], sizes = [8, 8], strides = [1, 1]} : vector<8x96xf32> to vector<8x8xf32>
    %58 = tpu.transpose %56, [1, 0] : vector<8x8xf32> -> vector<8x8xf32>
    %cst_20 = arith.constant dense<0.000000e+00> : vector<8x8xf32>
    %59 = tpu.matmul %55, %58, %cst_20 {dimension_numbers = #tpu.dot_dimension_numbers<[1], [0], [0], [1], [0, 0, 1, 1], [], []>} : vector<8x8xf32>, vector<8x8xf32>, vector<8x8xf32> -> vector<8x8xf32>
    %cst_21 = arith.constant 0.353553385 : f32
    %60 = vector.broadcast %cst_21 : f32 to vector<8x8xf32>
    %61 = arith.mulf %59, %60 : vector<8x8xf32>
    %cst_22 = arith.constant dense<0xFF800000> : vector<8xf32>
    %62 = vector.multi_reduction <maximumf>, %61, %cst_22 [1] : vector<8x8xf32> to vector<8xf32>
    %63 = vector.shape_cast %62 : vector<8xf32> to vector<8x1xf32>
    %64 = vector.broadcast %63 : vector<8x1xf32> to vector<8x8xf32>
    %65 = arith.subf %61, %64 : vector<8x8xf32>
    %66 = math.exp %65 : vector<8x8xf32>
    %cst_23 = arith.constant dense<0.000000e+00> : vector<8xf32>
    %67 = vector.multi_reduction <add>, %66, %cst_23 [1] : vector<8x8xf32> to vector<8xf32>
    %68 = vector.shape_cast %67 : vector<8xf32> to vector<8x1xf32>
    %69 = tpu.reciprocal %68 {approx = true} : vector<8x1xf32> -> vector<8x1xf32>
    %70 = vector.broadcast %69 : vector<8x1xf32> to vector<8x8xf32>
    %71 = arith.mulf %66, %70 : vector<8x8xf32>
    %cst_24 = arith.constant dense<0.000000e+00> : vector<8x8xf32>
    %72 = tpu.matmul %71, %57, %cst_24 {dimension_numbers = #tpu.dot_dimension_numbers<[1], [0], [0], [1], [0, 0, 1, 1], [], []>} : vector<8x8xf32>, vector<8x8xf32>, vector<8x8xf32> -> vector<8x8xf32>
    %c0_25 = arith.constant 0 : index
    %c16 = arith.constant 16 : index
    %73 = vector.load %arg9[%c0_25, %c16] : memref<16x32xf32, #tpu.memory_space<vmem>>, vector<8x8xf32>
    tpu.vector_store %arg9[%c0_25, %c16], %72 {strides = array<i32>} : memref<16x32xf32, #tpu.memory_space<vmem>>, vector<8x8xf32>,
    %74 = vector.extract_strided_slice %16 {offsets = [0, 24], sizes = [8, 8], strides = [1, 1]} : vector<8x96xf32> to vector<8x8xf32>
    %75 = vector.extract_strided_slice %16 {offsets = [0, 56], sizes = [8, 8], strides = [1, 1]} : vector<8x96xf32> to vector<8x8xf32>
    %76 = vector.extract_strided_slice %16 {offsets = [0, 88], sizes = [8, 8], strides = [1, 1]} : vector<8x96xf32> to vector<8x8xf32>
    %77 = tpu.transpose %75, [1, 0] : vector<8x8xf32> -> vector<8x8xf32>
    %cst_26 = arith.constant dense<0.000000e+00> : vector<8x8xf32>
    %78 = tpu.matmul %74, %77, %cst_26 {dimension_numbers = #tpu.dot_dimension_numbers<[1], [0], [0], [1], [0, 0, 1, 1], [], []>} : vector<8x8xf32>, vector<8x8xf32>, vector<8x8xf32> -> vector<8x8xf32>
    %cst_27 = arith.constant 0.353553385 : f32
    %79 = vector.broadcast %cst_27 : f32 to vector<8x8xf32>
    %80 = arith.mulf %78, %79 : vector<8x8xf32>
    %cst_28 = arith.constant dense<0xFF800000> : vector<8xf32>
    %81 = vector.multi_reduction <maximumf>, %80, %cst_28 [1] : vector<8x8xf32> to vector<8xf32>
    %82 = vector.shape_cast %81 : vector<8xf32> to vector<8x1xf32>
    %83 = vector.broadcast %82 : vector<8x1xf32> to vector<8x8xf32>
    %84 = arith.subf %80, %83 : vector<8x8xf32>
    %85 = math.exp %84 : vector<8x8xf32>
    %cst_29 = arith.constant dense<0.000000e+00> : vector<8xf32>
    %86 = vector.multi_reduction <add>, %85, %cst_29 [1] : vector<8x8xf32> to vector<8xf32>
    %87 = vector.shape_cast %86 : vector<8xf32> to vector<8x1xf32>
    %88 = tpu.reciprocal %87 {approx = true} : vector<8x1xf32> -> vector<8x1xf32>
    %89 = vector.broadcast %88 : vector<8x1xf32> to vector<8x8xf32>
    %90 = arith.mulf %85, %89 : vector<8x8xf32>
    %cst_30 = arith.constant dense<0.000000e+00> : vector<8x8xf32>
    %91 = tpu.matmul %90, %76, %cst_30 {dimension_numbers = #tpu.dot_dimension_numbers<[1], [0], [0], [1], [0, 0, 1, 1], [], []>} : vector<8x8xf32>, vector<8x8xf32>, vector<8x8xf32> -> vector<8x8xf32>
    %c0_31 = arith.constant 0 : index
    %c24 = arith.constant 24 : index
    %92 = vector.load %arg9[%c0_31, %c24] : memref<16x32xf32, #tpu.memory_space<vmem>>, vector<8x8xf32>
    tpu.vector_store %arg9[%c0_31, %c24], %91 {strides = array<i32>} : memref<16x32xf32, #tpu.memory_space<vmem>>, vector<8x8xf32>,
    %93 = vector.extract_strided_slice %15 {offsets = [8, 0], sizes = [8, 96], strides = [1, 1]} : vector<16x96xf32> to vector<8x96xf32>
    %94 = vector.extract_strided_slice %93 {offsets = [0, 0], sizes = [8, 8], strides = [1, 1]} : vector<8x96xf32> to vector<8x8xf32>
    %95 = vector.extract_strided_slice %93 {offsets = [0, 32], sizes = [8, 8], strides = [1, 1]} : vector<8x96xf32> to vector<8x8xf32>
    %96 = vector.extract_strided_slice %93 {offsets = [0, 64], sizes = [8, 8], strides = [1, 1]} : vector<8x96xf32> to vector<8x8xf32>
    %97 = tpu.transpose %95, [1, 0] : vector<8x8xf32> -> vector<8x8xf32>
    %cst_32 = arith.constant dense<0.000000e+00> : vector<8x8xf32>
    %98 = tpu.matmul %94, %97, %cst_32 {dimension_numbers = #tpu.dot_dimension_numbers<[1], [0], [0], [1], [0, 0, 1, 1], [], []>} : vector<8x8xf32>, vector<8x8xf32>, vector<8x8xf32> -> vector<8x8xf32>
    %cst_33 = arith.constant 0.353553385 : f32
    %99 = vector.broadcast %cst_33 : f32 to vector<8x8xf32>
    %100 = arith.mulf %98, %99 : vector<8x8xf32>
    %cst_34 = arith.constant dense<0xFF800000> : vector<8xf32>
    %101 = vector.multi_reduction <maximumf>, %100, %cst_34 [1] : vector<8x8xf32> to vector<8xf32>
    %102 = vector.shape_cast %101 : vector<8xf32> to vector<8x1xf32>
    %103 = vector.broadcast %102 : vector<8x1xf32> to vector<8x8xf32>
    %104 = arith.subf %100, %103 : vector<8x8xf32>
    %105 = math.exp %104 : vector<8x8xf32>
    %cst_35 = arith.constant dense<0.000000e+00> : vector<8xf32>
    %106 = vector.multi_reduction <add>, %105, %cst_35 [1] : vector<8x8xf32> to vector<8xf32>
    %107 = vector.shape_cast %106 : vector<8xf32> to vector<8x1xf32>
    %108 = tpu.reciprocal %107 {approx = true} : vector<8x1xf32> -> vector<8x1xf32>
    %109 = vector.broadcast %108 : vector<8x1xf32> to vector<8x8xf32>
    %110 = arith.mulf %105, %109 : vector<8x8xf32>
    %cst_36 = arith.constant dense<0.000000e+00> : vector<8x8xf32>
    %111 = tpu.matmul %110, %96, %cst_36 {dimension_numbers = #tpu.dot_dimension_numbers<[1], [0], [0], [1], [0, 0, 1, 1], [], []>} : vector<8x8xf32>, vector<8x8xf32>, vector<8x8xf32> -> vector<8x8xf32>
    %c8_37 = arith.constant 8 : index
    %c0_38 = arith.constant 0 : index
    %112 = vector.load %arg9[%c8_37, %c0_38] : memref<16x32xf32, #tpu.memory_space<vmem>>, vector<8x8xf32>
    tpu.vector_store %arg9[%c8_37, %c0_38], %111 {strides = array<i32>} : memref<16x32xf32, #tpu.memory_space<vmem>>, vector<8x8xf32>,
    %113 = vector.extract_strided_slice %93 {offsets = [0, 8], sizes = [8, 8], strides = [1, 1]} : vector<8x96xf32> to vector<8x8xf32>
    %114 = vector.extract_strided_slice %93 {offsets = [0, 40], sizes = [8, 8], strides = [1, 1]} : vector<8x96xf32> to vector<8x8xf32>
    %115 = vector.extract_strided_slice %93 {offsets = [0, 72], sizes = [8, 8], strides = [1, 1]} : vector<8x96xf32> to vector<8x8xf32>
    %116 = tpu.transpose %114, [1, 0] : vector<8x8xf32> -> vector<8x8xf32>
    %cst_39 = arith.constant dense<0.000000e+00> : vector<8x8xf32>
    %117 = tpu.matmul %113, %116, %cst_39 {dimension_numbers = #tpu.dot_dimension_numbers<[1], [0], [0], [1], [0, 0, 1, 1], [], []>} : vector<8x8xf32>, vector<8x8xf32>, vector<8x8xf32> -> vector<8x8xf32>
    %cst_40 = arith.constant 0.353553385 : f32
    %118 = vector.broadcast %cst_40 : f32 to vector<8x8xf32>
    %119 = arith.mulf %117, %118 : vector<8x8xf32>
    %cst_41 = arith.constant dense<0xFF800000> : vector<8xf32>
    %120 = vector.multi_reduction <maximumf>, %119, %cst_41 [1] : vector<8x8xf32> to vector<8xf32>
    %121 = vector.shape_cast %120 : vector<8xf32> to vector<8x1xf32>
    %122 = vector.broadcast %121 : vector<8x1xf32> to vector<8x8xf32>
    %123 = arith.subf %119, %122 : vector<8x8xf32>
    %124 = math.exp %123 : vector<8x8xf32>
    %cst_42 = arith.constant dense<0.000000e+00> : vector<8xf32>
    %125 = vector.multi_reduction <add>, %124, %cst_42 [1] : vector<8x8xf32> to vector<8xf32>
    %126 = vector.shape_cast %125 : vector<8xf32> to vector<8x1xf32>
    %127 = tpu.reciprocal %126 {approx = true} : vector<8x1xf32> -> vector<8x1xf32>
    %128 = vector.broadcast %127 : vector<8x1xf32> to vector<8x8xf32>
    %129 = arith.mulf %124, %128 : vector<8x8xf32>
    %cst_43 = arith.constant dense<0.000000e+00> : vector<8x8xf32>
    %130 = tpu.matmul %129, %115, %cst_43 {dimension_numbers = #tpu.dot_dimension_numbers<[1], [0], [0], [1], [0, 0, 1, 1], [], []>} : vector<8x8xf32>, vector<8x8xf32>, vector<8x8xf32> -> vector<8x8xf32>
    %c8_44 = arith.constant 8 : index
    %c8_45 = arith.constant 8 : index
    %131 = vector.load %arg9[%c8_44, %c8_45] : memref<16x32xf32, #tpu.memory_space<vmem>>, vector<8x8xf32>
    tpu.vector_store %arg9[%c8_44, %c8_45], %130 {strides = array<i32>} : memref<16x32xf32, #tpu.memory_space<vmem>>, vector<8x8xf32>,
    %132 = vector.extract_strided_slice %93 {offsets = [0, 16], sizes = [8, 8], strides = [1, 1]} : vector<8x96xf32> to vector<8x8xf32>
    %133 = vector.extract_strided_slice %93 {offsets = [0, 48], sizes = [8, 8], strides = [1, 1]} : vector<8x96xf32> to vector<8x8xf32>
    %134 = vector.extract_strided_slice %93 {offsets = [0, 80], sizes = [8, 8], strides = [1, 1]} : vector<8x96xf32> to vector<8x8xf32>
    %135 = tpu.transpose %133, [1, 0] : vector<8x8xf32> -> vector<8x8xf32>
    %cst_46 = arith.constant dense<0.000000e+00> : vector<8x8xf32>
    %136 = tpu.matmul %132, %135, %cst_46 {dimension_numbers = #tpu.dot_dimension_numbers<[1], [0], [0], [1], [0, 0, 1, 1], [], []>} : vector<8x8xf32>, vector<8x8xf32>, vector<8x8xf32> -> vector<8x8xf32>
    %cst_47 = arith.constant 0.353553385 : f32
    %137 = vector.broadcast %cst_47 : f32 to vector<8x8xf32>
    %138 = arith.mulf %136, %137 : vector<8x8xf32>
    %cst_48 = arith.constant dense<0xFF800000> : vector<8xf32>
    %139 = vector.multi_reduction <maximumf>, %138, %cst_48 [1] : vector<8x8xf32> to vector<8xf32>
    %140 = vector.shape_cast %139 : vector<8xf32> to vector<8x1xf32>
    %141 = vector.broadcast %140 : vector<8x1xf32> to vector<8x8xf32>
    %142 = arith.subf %138, %141 : vector<8x8xf32>
    %143 = math.exp %142 : vector<8x8xf32>
    %cst_49 = arith.constant dense<0.000000e+00> : vector<8xf32>
    %144 = vector.multi_reduction <add>, %143, %cst_49 [1] : vector<8x8xf32> to vector<8xf32>
    %145 = vector.shape_cast %144 : vector<8xf32> to vector<8x1xf32>
    %146 = tpu.reciprocal %145 {approx = true} : vector<8x1xf32> -> vector<8x1xf32>
    %147 = vector.broadcast %146 : vector<8x1xf32> to vector<8x8xf32>
    %148 = arith.mulf %143, %147 : vector<8x8xf32>
    %cst_50 = arith.constant dense<0.000000e+00> : vector<8x8xf32>
    %149 = tpu.matmul %148, %134, %cst_50 {dimension_numbers = #tpu.dot_dimension_numbers<[1], [0], [0], [1], [0, 0, 1, 1], [], []>} : vector<8x8xf32>, vector<8x8xf32>, vector<8x8xf32> -> vector<8x8xf32>
    %c8_51 = arith.constant 8 : index
    %c16_52 = arith.constant 16 : index
    %150 = vector.load %arg9[%c8_51, %c16_52] : memref<16x32xf32, #tpu.memory_space<vmem>>, vector<8x8xf32>
    tpu.vector_store %arg9[%c8_51, %c16_52], %149 {strides = array<i32>} : memref<16x32xf32, #tpu.memory_space<vmem>>, vector<8x8xf32>,
    %151 = vector.extract_strided_slice %93 {offsets = [0, 24], sizes = [8, 8], strides = [1, 1]} : vector<8x96xf32> to vector<8x8xf32>
    %152 = vector.extract_strided_slice %93 {offsets = [0, 56], sizes = [8, 8], strides = [1, 1]} : vector<8x96xf32> to vector<8x8xf32>
    %153 = vector.extract_strided_slice %93 {offsets = [0, 88], sizes = [8, 8], strides = [1, 1]} : vector<8x96xf32> to vector<8x8xf32>
    %154 = tpu.transpose %152, [1, 0] : vector<8x8xf32> -> vector<8x8xf32>
    %cst_53 = arith.constant dense<0.000000e+00> : vector<8x8xf32>
    %155 = tpu.matmul %151, %154, %cst_53 {dimension_numbers = #tpu.dot_dimension_numbers<[1], [0], [0], [1], [0, 0, 1, 1], [], []>} : vector<8x8xf32>, vector<8x8xf32>, vector<8x8xf32> -> vector<8x8xf32>
    %cst_54 = arith.constant 0.353553385 : f32
    %156 = vector.broadcast %cst_54 : f32 to vector<8x8xf32>
    %157 = arith.mulf %155, %156 : vector<8x8xf32>
    %cst_55 = arith.constant dense<0xFF800000> : vector<8xf32>
    %158 = vector.multi_reduction <maximumf>, %157, %cst_55 [1] : vector<8x8xf32> to vector<8xf32>
    %159 = vector.shape_cast %158 : vector<8xf32> to vector<8x1xf32>
    %160 = vector.broadcast %159 : vector<8x1xf32> to vector<8x8xf32>
    %161 = arith.subf %157, %160 : vector<8x8xf32>
    %162 = math.exp %161 : vector<8x8xf32>
    %cst_56 = arith.constant dense<0.000000e+00> : vector<8xf32>
    %163 = vector.multi_reduction <add>, %162, %cst_56 [1] : vector<8x8xf32> to vector<8xf32>
    %164 = vector.shape_cast %163 : vector<8xf32> to vector<8x1xf32>
    %165 = tpu.reciprocal %164 {approx = true} : vector<8x1xf32> -> vector<8x1xf32>
    %166 = vector.broadcast %165 : vector<8x1xf32> to vector<8x8xf32>
    %167 = arith.mulf %162, %166 : vector<8x8xf32>
    %cst_57 = arith.constant dense<0.000000e+00> : vector<8x8xf32>
    %168 = tpu.matmul %167, %153, %cst_57 {dimension_numbers = #tpu.dot_dimension_numbers<[1], [0], [0], [1], [0, 0, 1, 1], [], []>} : vector<8x8xf32>, vector<8x8xf32>, vector<8x8xf32> -> vector<8x8xf32>
    %c8_58 = arith.constant 8 : index
    %c24_59 = arith.constant 24 : index
    %169 = vector.load %arg9[%c8_58, %c24_59] : memref<16x32xf32, #tpu.memory_space<vmem>>, vector<8x8xf32>
    tpu.vector_store %arg9[%c8_58, %c24_59], %168 {strides = array<i32>} : memref<16x32xf32, #tpu.memory_space<vmem>>, vector<8x8xf32>,
    %c0_60 = arith.constant 0 : index
    %c0_61 = arith.constant 0 : index
    %170 = vector.load %arg9[%c0_60, %c0_61] : memref<16x32xf32, #tpu.memory_space<vmem>>, vector<16x32xf32>
    %c0_62 = arith.constant 0 : index
    %c0_63 = arith.constant 0 : index
    %c0_64 = arith.constant 0 : index
    %171 = vector.load %arg3[%c0_62, %c0_63, %c0_64] : memref<2x32x32xf32, #tpu.memory_space<vmem>>, vector<1x32x32xf32>
    %172 = vector.shape_cast %171 : vector<1x32x32xf32> to vector<32x32xf32>
    %cst_65 = arith.constant dense<0.000000e+00> : vector<16x32xf32>
    %173 = tpu.matmul %170, %172, %cst_65 {dimension_numbers = #tpu.dot_dimension_numbers<[1], [0], [0], [1], [0, 0, 1, 1], [], []>} : vector<16x32xf32>, vector<32x32xf32>, vector<16x32xf32> -> vector<16x32xf32>
    %174 = vector.broadcast %4 : vector<1x32xf32> to vector<16x32xf32>
    %175 = arith.addf %173, %174 : vector<16x32xf32>
    %176 = arith.addf %0, %175 : vector<16x32xf32>
    %cst_66 = arith.constant dense<0.000000e+00> : vector<16xf32>
    %177 = vector.multi_reduction <add>, %176, %cst_66 [1] : vector<16x32xf32> to vector<16xf32>
    %178 = vector.shape_cast %177 : vector<16xf32> to vector<16x1xf32>
    %cst_67 = arith.constant 3.200000e+01 : f32
    %179 = vector.broadcast %cst_67 : f32 to vector<16x1xf32>
    %180 = arith.divf %178, %179 : vector<16x1xf32>
    %181 = vector.broadcast %180 : vector<16x1xf32> to vector<16x32xf32>
    %182 = arith.subf %176, %181 : vector<16x32xf32>
    %183 = arith.mulf %182, %182 : vector<16x32xf32>
    %cst_68 = arith.constant dense<0.000000e+00> : vector<16xf32>
    %184 = vector.multi_reduction <add>, %183, %cst_68 [1] : vector<16x32xf32> to vector<16xf32>
    %185 = vector.shape_cast %184 : vector<16xf32> to vector<16x1xf32>
    %cst_69 = arith.constant 3.100000e+01 : f32
    %186 = vector.broadcast %cst_69 : f32 to vector<16x1xf32>
    %187 = arith.divf %185, %186 : vector<16x1xf32>
    %188 = math.sqrt %187 : vector<16x1xf32>
    %189 = vector.broadcast %5 : vector<1x32xf32> to vector<16x32xf32>
    %190 = arith.mulf %189, %182 : vector<16x32xf32>
    %cst_70 = arith.constant 9.99999997E-7 : f32
    %191 = vector.broadcast %cst_70 : f32 to vector<16x1xf32>
    %192 = arith.addf %188, %191 : vector<16x1xf32>
    %193 = vector.broadcast %192 : vector<16x1xf32> to vector<16x32xf32>
    %194 = arith.divf %190, %193 : vector<16x32xf32>
    %195 = vector.broadcast %6 : vector<1x32xf32> to vector<16x32xf32>
    %196 = arith.addf %194, %195 : vector<16x32xf32>
    %c0_71 = arith.constant 0 : index
    %c0_72 = arith.constant 0 : index
    %c0_73 = arith.constant 0 : index
    %197 = vector.load %arg4[%c0_71, %c0_72, %c0_73] : memref<2x32x64xf32, #tpu.memory_space<vmem>>, vector<1x32x64xf32>
    %198 = vector.shape_cast %197 : vector<1x32x64xf32> to vector<32x64xf32>
    %cst_74 = arith.constant dense<0.000000e+00> : vector<16x64xf32>
    %199 = tpu.matmul %196, %198, %cst_74 {dimension_numbers = #tpu.dot_dimension_numbers<[1], [0], [0], [1], [0, 0, 1, 1], [], []>} : vector<16x32xf32>, vector<32x64xf32>, vector<16x64xf32> -> vector<16x64xf32>
    %200 = vector.broadcast %7 : vector<1x64xf32> to vector<16x64xf32>
    %201 = arith.addf %199, %200 : vector<16x64xf32>
    %cst_75 = arith.constant 0.000000e+00 : f32
    %202 = vector.broadcast %cst_75 : f32 to vector<16x64xf32>
    %203 = arith.maximumf %201, %202 : vector<16x64xf32>
    %c0_76 = arith.constant 0 : index
    %c0_77 = arith.constant 0 : index
    %c0_78 = arith.constant 0 : index
    %204 = vector.load %arg5[%c0_76, %c0_77, %c0_78] : memref<2x64x32xf32, #tpu.memory_space<vmem>>, vector<1x64x32xf32>
    %205 = vector.shape_cast %204 : vector<1x64x32xf32> to vector<64x32xf32>
    %cst_79 = arith.constant dense<0.000000e+00> : vector<16x32xf32>
    %206 = tpu.matmul %203, %205, %cst_79 {dimension_numbers = #tpu.dot_dimension_numbers<[1], [0], [0], [1], [0, 0, 1, 1], [], []>} : vector<16x64xf32>, vector<64x32xf32>, vector<16x32xf32> -> vector<16x32xf32>
    %207 = vector.broadcast %8 : vector<1x32xf32> to vector<16x32xf32>
    %208 = arith.addf %206, %207 : vector<16x32xf32>
    %209 = arith.addf %196, %208 : vector<16x32xf32>
    %cst_80 = arith.constant dense<0.000000e+00> : vector<16xf32>
    %210 = vector.multi_reduction <add>, %209, %cst_80 [1] : vector<16x32xf32> to vector<16xf32>
    %211 = vector.shape_cast %210 : vector<16xf32> to vector<16x1xf32>
    %cst_81 = arith.constant 3.200000e+01 : f32
    %212 = vector.broadcast %cst_81 : f32 to vector<16x1xf32>
    %213 = arith.divf %211, %212 : vector<16x1xf32>
    %214 = vector.broadcast %213 : vector<16x1xf32> to vector<16x32xf32>
    %215 = arith.subf %209, %214 : vector<16x32xf32>
    %216 = arith.mulf %215, %215 : vector<16x32xf32>
    %cst_82 = arith.constant dense<0.000000e+00> : vector<16xf32>
    %217 = vector.multi_reduction <add>, %216, %cst_82 [1] : vector<16x32xf32> to vector<16xf32>
    %218 = vector.shape_cast %217 : vector<16xf32> to vector<16x1xf32>
    %cst_83 = arith.constant 3.100000e+01 : f32
    %219 = vector.broadcast %cst_83 : f32 to vector<16x1xf32>
    %220 = arith.divf %218, %219 : vector<16x1xf32>
    %221 = math.sqrt %220 : vector<16x1xf32>
    %222 = vector.broadcast %9 : vector<1x32xf32> to vector<16x32xf32>
    %223 = arith.mulf %222, %215 : vector<16x32xf32>
    %cst_84 = arith.constant 9.99999997E-7 : f32
    %224 = vector.broadcast %cst_84 : f32 to vector<16x1xf32>
    %225 = arith.addf %221, %224 : vector<16x1xf32>
    %226 = vector.broadcast %225 : vector<16x1xf32> to vector<16x32xf32>
    %227 = arith.divf %223, %226 : vector<16x32xf32>
    %228 = vector.broadcast %10 : vector<1x32xf32> to vector<16x32xf32>
    %229 = arith.addf %227, %228 : vector<16x32xf32>
    %c1 = arith.constant 1 : index
    %c0_85 = arith.constant 0 : index
    %c0_86 = arith.constant 0 : index
    %230 = vector.load %arg6[%c1, %c0_85, %c0_86] : memref<2x8x96xf32, #tpu.memory_space<vmem>>, vector<1x8x96xf32>
    %231 = vector.shape_cast %230 : vector<1x8x96xf32> to vector<8x96xf32>
    %232 = vector.extract_strided_slice %231 {offsets = [0, 0], sizes = [1, 96], strides = [1, 1]} : vector<8x96xf32> to vector<1x96xf32>
    %233 = vector.extract_strided_slice %231 {offsets = [1, 0], sizes = [1, 32], strides = [1, 1]} : vector<8x96xf32> to vector<1x32xf32>
    %234 = vector.extract_strided_slice %231 {offsets = [2, 0], sizes = [1, 32], strides = [1, 1]} : vector<8x96xf32> to vector<1x32xf32>
    %235 = vector.extract_strided_slice %231 {offsets = [3, 0], sizes = [1, 32], strides = [1, 1]} : vector<8x96xf32> to vector<1x32xf32>
    %236 = vector.extract_strided_slice %231 {offsets = [4, 0], sizes = [1, 64], strides = [1, 1]} : vector<8x96xf32> to vector<1x64xf32>
    %237 = vector.extract_strided_slice %231 {offsets = [5, 0], sizes = [1, 32], strides = [1, 1]} : vector<8x96xf32> to vector<1x32xf32>
    %238 = vector.extract_strided_slice %231 {offsets = [6, 0], sizes = [1, 32], strides = [1, 1]} : vector<8x96xf32> to vector<1x32xf32>
    %239 = vector.extract_strided_slice %231 {offsets = [7, 0], sizes = [1, 32], strides = [1, 1]} : vector<8x96xf32> to vector<1x32xf32>
    %c1_87 = arith.constant 1 : index
    %c0_88 = arith.constant 0 : index
    %c0_89 = arith.constant 0 : index
    %240 = vector.load %arg2[%c1_87, %c0_88, %c0_89] : memref<2x32x96xf32, #tpu.memory_space<vmem>>, vector<1x32x96xf32>
    %241 = vector.shape_cast %240 : vector<1x32x96xf32> to vector<32x96xf32>
    %cst_90 = arith.constant dense<0.000000e+00> : vector<16x96xf32>
    %242 = tpu.matmul %229, %241, %cst_90 {dimension_numbers = #tpu.dot_dimension_numbers<[1], [0], [0], [1], [0, 0, 1, 1], [], []>} : vector<16x32xf32>, vector<32x96xf32>, vector<16x96xf32> -> vector<16x96xf32>
    %243 = vector.broadcast %232 : vector<1x96xf32> to vector<16x96xf32>
    %244 = arith.addf %242, %243 : vector<16x96xf32>
    %245 = vector.extract_strided_slice %244 {offsets = [0, 0], sizes = [8, 96], strides = [1, 1]} : vector<16x96xf32> to vector<8x96xf32>
    %246 = vector.extract_strided_slice %245 {offsets = [0, 0], sizes = [8, 8], strides = [1, 1]} : vector<8x96xf32> to vector<8x8xf32>
    %247 = vector.extract_strided_slice %245 {offsets = [0, 32], sizes = [8, 8], strides = [1, 1]} : vector<8x96xf32> to vector<8x8xf32>
    %248 = vector.extract_strided_slice %245 {offsets = [0, 64], sizes = [8, 8], strides = [1, 1]} : vector<8x96xf32> to vector<8x8xf32>
    %249 = tpu.transpose %247, [1, 0] : vector<8x8xf32> -> vector<8x8xf32>
    %cst_91 = arith.constant dense<0.000000e+00> : vector<8x8xf32>
    %250 = tpu.matmul %246, %249, %cst_91 {dimension_numbers = #tpu.dot_dimension_numbers<[1], [0], [0], [1], [0, 0, 1, 1], [], []>} : vector<8x8xf32>, vector<8x8xf32>, vector<8x8xf32> -> vector<8x8xf32>
    %cst_92 = arith.constant 0.353553385 : f32
    %251 = vector.broadcast %cst_92 : f32 to vector<8x8xf32>
    %252 = arith.mulf %250, %251 : vector<8x8xf32>
    %cst_93 = arith.constant dense<0xFF800000> : vector<8xf32>
    %253 = vector.multi_reduction <maximumf>, %252, %cst_93 [1] : vector<8x8xf32> to vector<8xf32>
    %254 = vector.shape_cast %253 : vector<8xf32> to vector<8x1xf32>
    %255 = vector.broadcast %254 : vector<8x1xf32> to vector<8x8xf32>
    %256 = arith.subf %252, %255 : vector<8x8xf32>
    %257 = math.exp %256 : vector<8x8xf32>
    %cst_94 = arith.constant dense<0.000000e+00> : vector<8xf32>
    %258 = vector.multi_reduction <add>, %257, %cst_94 [1] : vector<8x8xf32> to vector<8xf32>
    %259 = vector.shape_cast %258 : vector<8xf32> to vector<8x1xf32>
    %260 = tpu.reciprocal %259 {approx = true} : vector<8x1xf32> -> vector<8x1xf32>
    %261 = vector.broadcast %260 : vector<8x1xf32> to vector<8x8xf32>
    %262 = arith.mulf %257, %261 : vector<8x8xf32>
    %cst_95 = arith.constant dense<0.000000e+00> : vector<8x8xf32>
    %263 = tpu.matmul %262, %248, %cst_95 {dimension_numbers = #tpu.dot_dimension_numbers<[1], [0], [0], [1], [0, 0, 1, 1], [], []>} : vector<8x8xf32>, vector<8x8xf32>, vector<8x8xf32> -> vector<8x8xf32>
    %c0_96 = arith.constant 0 : index
    %c0_97 = arith.constant 0 : index
    %264 = vector.load %arg9[%c0_96, %c0_97] : memref<16x32xf32, #tpu.memory_space<vmem>>, vector<8x8xf32>
    tpu.vector_store %arg9[%c0_96, %c0_97], %263 {strides = array<i32>} : memref<16x32xf32, #tpu.memory_space<vmem>>, vector<8x8xf32>,
    %265 = vector.extract_strided_slice %245 {offsets = [0, 8], sizes = [8, 8], strides = [1, 1]} : vector<8x96xf32> to vector<8x8xf32>
    %266 = vector.extract_strided_slice %245 {offsets = [0, 40], sizes = [8, 8], strides = [1, 1]} : vector<8x96xf32> to vector<8x8xf32>
    %267 = vector.extract_strided_slice %245 {offsets = [0, 72], sizes = [8, 8], strides = [1, 1]} : vector<8x96xf32> to vector<8x8xf32>
    %268 = tpu.transpose %266, [1, 0] : vector<8x8xf32> -> vector<8x8xf32>
    %cst_98 = arith.constant dense<0.000000e+00> : vector<8x8xf32>
    %269 = tpu.matmul %265, %268, %cst_98 {dimension_numbers = #tpu.dot_dimension_numbers<[1], [0], [0], [1], [0, 0, 1, 1], [], []>} : vector<8x8xf32>, vector<8x8xf32>, vector<8x8xf32> -> vector<8x8xf32>
    %cst_99 = arith.constant 0.353553385 : f32
    %270 = vector.broadcast %cst_99 : f32 to vector<8x8xf32>
    %271 = arith.mulf %269, %270 : vector<8x8xf32>
    %cst_100 = arith.constant dense<0xFF800000> : vector<8xf32>
    %272 = vector.multi_reduction <maximumf>, %271, %cst_100 [1] : vector<8x8xf32> to vector<8xf32>
    %273 = vector.shape_cast %272 : vector<8xf32> to vector<8x1xf32>
    %274 = vector.broadcast %273 : vector<8x1xf32> to vector<8x8xf32>
    %275 = arith.subf %271, %274 : vector<8x8xf32>
    %276 = math.exp %275 : vector<8x8xf32>
    %cst_101 = arith.constant dense<0.000000e+00> : vector<8xf32>
    %277 = vector.multi_reduction <add>, %276, %cst_101 [1] : vector<8x8xf32> to vector<8xf32>
    %278 = vector.shape_cast %277 : vector<8xf32> to vector<8x1xf32>
    %279 = tpu.reciprocal %278 {approx = true} : vector<8x1xf32> -> vector<8x1xf32>
    %280 = vector.broadcast %279 : vector<8x1xf32> to vector<8x8xf32>
    %281 = arith.mulf %276, %280 : vector<8x8xf32>
    %cst_102 = arith.constant dense<0.000000e+00> : vector<8x8xf32>
    %282 = tpu.matmul %281, %267, %cst_102 {dimension_numbers = #tpu.dot_dimension_numbers<[1], [0], [0], [1], [0, 0, 1, 1], [], []>} : vector<8x8xf32>, vector<8x8xf32>, vector<8x8xf32> -> vector<8x8xf32>
    %c0_103 = arith.constant 0 : index
    %c8_104 = arith.constant 8 : index
    %283 = vector.load %arg9[%c0_103, %c8_104] : memref<16x32xf32, #tpu.memory_space<vmem>>, vector<8x8xf32>
    tpu.vector_store %arg9[%c0_103, %c8_104], %282 {strides = array<i32>} : memref<16x32xf32, #tpu.memory_space<vmem>>, vector<8x8xf32>,
    %284 = vector.extract_strided_slice %245 {offsets = [0, 16], sizes = [8, 8], strides = [1, 1]} : vector<8x96xf32> to vector<8x8xf32>
    %285 = vector.extract_strided_slice %245 {offsets = [0, 48], sizes = [8, 8], strides = [1, 1]} : vector<8x96xf32> to vector<8x8xf32>
    %286 = vector.extract_strided_slice %245 {offsets = [0, 80], sizes = [8, 8], strides = [1, 1]} : vector<8x96xf32> to vector<8x8xf32>
    %287 = tpu.transpose %285, [1, 0] : vector<8x8xf32> -> vector<8x8xf32>
    %cst_105 = arith.constant dense<0.000000e+00> : vector<8x8xf32>
    %288 = tpu.matmul %284, %287, %cst_105 {dimension_numbers = #tpu.dot_dimension_numbers<[1], [0], [0], [1], [0, 0, 1, 1], [], []>} : vector<8x8xf32>, vector<8x8xf32>, vector<8x8xf32> -> vector<8x8xf32>
    %cst_106 = arith.constant 0.353553385 : f32
    %289 = vector.broadcast %cst_106 : f32 to vector<8x8xf32>
    %290 = arith.mulf %288, %289 : vector<8x8xf32>
    %cst_107 = arith.constant dense<0xFF800000> : vector<8xf32>
    %291 = vector.multi_reduction <maximumf>, %290, %cst_107 [1] : vector<8x8xf32> to vector<8xf32>
    %292 = vector.shape_cast %291 : vector<8xf32> to vector<8x1xf32>
    %293 = vector.broadcast %292 : vector<8x1xf32> to vector<8x8xf32>
    %294 = arith.subf %290, %293 : vector<8x8xf32>
    %295 = math.exp %294 : vector<8x8xf32>
    %cst_108 = arith.constant dense<0.000000e+00> : vector<8xf32>
    %296 = vector.multi_reduction <add>, %295, %cst_108 [1] : vector<8x8xf32> to vector<8xf32>
    %297 = vector.shape_cast %296 : vector<8xf32> to vector<8x1xf32>
    %298 = tpu.reciprocal %297 {approx = true} : vector<8x1xf32> -> vector<8x1xf32>
    %299 = vector.broadcast %298 : vector<8x1xf32> to vector<8x8xf32>
    %300 = arith.mulf %295, %299 : vector<8x8xf32>
    %cst_109 = arith.constant dense<0.000000e+00> : vector<8x8xf32>
    %301 = tpu.matmul %300, %286, %cst_109 {dimension_numbers = #tpu.dot_dimension_numbers<[1], [0], [0], [1], [0, 0, 1, 1], [], []>} : vector<8x8xf32>, vector<8x8xf32>, vector<8x8xf32> -> vector<8x8xf32>
    %c0_110 = arith.constant 0 : index
    %c16_111 = arith.constant 16 : index
    %302 = vector.load %arg9[%c0_110, %c16_111] : memref<16x32xf32, #tpu.memory_space<vmem>>, vector<8x8xf32>
    tpu.vector_store %arg9[%c0_110, %c16_111], %301 {strides = array<i32>} : memref<16x32xf32, #tpu.memory_space<vmem>>, vector<8x8xf32>,
    %303 = vector.extract_strided_slice %245 {offsets = [0, 24], sizes = [8, 8], strides = [1, 1]} : vector<8x96xf32> to vector<8x8xf32>
    %304 = vector.extract_strided_slice %245 {offsets = [0, 56], sizes = [8, 8], strides = [1, 1]} : vector<8x96xf32> to vector<8x8xf32>
    %305 = vector.extract_strided_slice %245 {offsets = [0, 88], sizes = [8, 8], strides = [1, 1]} : vector<8x96xf32> to vector<8x8xf32>
    %306 = tpu.transpose %304, [1, 0] : vector<8x8xf32> -> vector<8x8xf32>
    %cst_112 = arith.constant dense<0.000000e+00> : vector<8x8xf32>
    %307 = tpu.matmul %303, %306, %cst_112 {dimension_numbers = #tpu.dot_dimension_numbers<[1], [0], [0], [1], [0, 0, 1, 1], [], []>} : vector<8x8xf32>, vector<8x8xf32>, vector<8x8xf32> -> vector<8x8xf32>
    %cst_113 = arith.constant 0.353553385 : f32
    %308 = vector.broadcast %cst_113 : f32 to vector<8x8xf32>
    %309 = arith.mulf %307, %308 : vector<8x8xf32>
    %cst_114 = arith.constant dense<0xFF800000> : vector<8xf32>
    %310 = vector.multi_reduction <maximumf>, %309, %cst_114 [1] : vector<8x8xf32> to vector<8xf32>
    %311 = vector.shape_cast %310 : vector<8xf32> to vector<8x1xf32>
    %312 = vector.broadcast %311 : vector<8x1xf32> to vector<8x8xf32>
    %313 = arith.subf %309, %312 : vector<8x8xf32>
    %314 = math.exp %313 : vector<8x8xf32>
    %cst_115 = arith.constant dense<0.000000e+00> : vector<8xf32>
    %315 = vector.multi_reduction <add>, %314, %cst_115 [1] : vector<8x8xf32> to vector<8xf32>
    %316 = vector.shape_cast %315 : vector<8xf32> to vector<8x1xf32>
    %317 = tpu.reciprocal %316 {approx = true} : vector<8x1xf32> -> vector<8x1xf32>
    %318 = vector.broadcast %317 : vector<8x1xf32> to vector<8x8xf32>
    %319 = arith.mulf %314, %318 : vector<8x8xf32>
    %cst_116 = arith.constant dense<0.000000e+00> : vector<8x8xf32>
    %320 = tpu.matmul %319, %305, %cst_116 {dimension_numbers = #tpu.dot_dimension_numbers<[1], [0], [0], [1], [0, 0, 1, 1], [], []>} : vector<8x8xf32>, vector<8x8xf32>, vector<8x8xf32> -> vector<8x8xf32>
    %c0_117 = arith.constant 0 : index
    %c24_118 = arith.constant 24 : index
    %321 = vector.load %arg9[%c0_117, %c24_118] : memref<16x32xf32, #tpu.memory_space<vmem>>, vector<8x8xf32>
    tpu.vector_store %arg9[%c0_117, %c24_118], %320 {strides = array<i32>} : memref<16x32xf32, #tpu.memory_space<vmem>>, vector<8x8xf32>,
    %322 = vector.extract_strided_slice %244 {offsets = [8, 0], sizes = [8, 96], strides = [1, 1]} : vector<16x96xf32> to vector<8x96xf32>
    %323 = vector.extract_strided_slice %322 {offsets = [0, 0], sizes = [8, 8], strides = [1, 1]} : vector<8x96xf32> to vector<8x8xf32>
    %324 = vector.extract_strided_slice %322 {offsets = [0, 32], sizes = [8, 8], strides = [1, 1]} : vector<8x96xf32> to vector<8x8xf32>
    %325 = vector.extract_strided_slice %322 {offsets = [0, 64], sizes = [8, 8], strides = [1, 1]} : vector<8x96xf32> to vector<8x8xf32>
    %326 = tpu.transpose %324, [1, 0] : vector<8x8xf32> -> vector<8x8xf32>
    %cst_119 = arith.constant dense<0.000000e+00> : vector<8x8xf32>
    %327 = tpu.matmul %323, %326, %cst_119 {dimension_numbers = #tpu.dot_dimension_numbers<[1], [0], [0], [1], [0, 0, 1, 1], [], []>} : vector<8x8xf32>, vector<8x8xf32>, vector<8x8xf32> -> vector<8x8xf32>
    %cst_120 = arith.constant 0.353553385 : f32
    %328 = vector.broadcast %cst_120 : f32 to vector<8x8xf32>
    %329 = arith.mulf %327, %328 : vector<8x8xf32>
    %cst_121 = arith.constant dense<0xFF800000> : vector<8xf32>
    %330 = vector.multi_reduction <maximumf>, %329, %cst_121 [1] : vector<8x8xf32> to vector<8xf32>
    %331 = vector.shape_cast %330 : vector<8xf32> to vector<8x1xf32>
    %332 = vector.broadcast %331 : vector<8x1xf32> to vector<8x8xf32>
    %333 = arith.subf %329, %332 : vector<8x8xf32>
    %334 = math.exp %333 : vector<8x8xf32>
    %cst_122 = arith.constant dense<0.000000e+00> : vector<8xf32>
    %335 = vector.multi_reduction <add>, %334, %cst_122 [1] : vector<8x8xf32> to vector<8xf32>
    %336 = vector.shape_cast %335 : vector<8xf32> to vector<8x1xf32>
    %337 = tpu.reciprocal %336 {approx = true} : vector<8x1xf32> -> vector<8x1xf32>
    %338 = vector.broadcast %337 : vector<8x1xf32> to vector<8x8xf32>
    %339 = arith.mulf %334, %338 : vector<8x8xf32>
    %cst_123 = arith.constant dense<0.000000e+00> : vector<8x8xf32>
    %340 = tpu.matmul %339, %325, %cst_123 {dimension_numbers = #tpu.dot_dimension_numbers<[1], [0], [0], [1], [0, 0, 1, 1], [], []>} : vector<8x8xf32>, vector<8x8xf32>, vector<8x8xf32> -> vector<8x8xf32>
    %c8_124 = arith.constant 8 : index
    %c0_125 = arith.constant 0 : index
    %341 = vector.load %arg9[%c8_124, %c0_125] : memref<16x32xf32, #tpu.memory_space<vmem>>, vector<8x8xf32>
    tpu.vector_store %arg9[%c8_124, %c0_125], %340 {strides = array<i32>} : memref<16x32xf32, #tpu.memory_space<vmem>>, vector<8x8xf32>,
    %342 = vector.extract_strided_slice %322 {offsets = [0, 8], sizes = [8, 8], strides = [1, 1]} : vector<8x96xf32> to vector<8x8xf32>
    %343 = vector.extract_strided_slice %322 {offsets = [0, 40], sizes = [8, 8], strides = [1, 1]} : vector<8x96xf32> to vector<8x8xf32>
    %344 = vector.extract_strided_slice %322 {offsets = [0, 72], sizes = [8, 8], strides = [1, 1]} : vector<8x96xf32> to vector<8x8xf32>
    %345 = tpu.transpose %343, [1, 0] : vector<8x8xf32> -> vector<8x8xf32>
    %cst_126 = arith.constant dense<0.000000e+00> : vector<8x8xf32>
    %346 = tpu.matmul %342, %345, %cst_126 {dimension_numbers = #tpu.dot_dimension_numbers<[1], [0], [0], [1], [0, 0, 1, 1], [], []>} : vector<8x8xf32>, vector<8x8xf32>, vector<8x8xf32> -> vector<8x8xf32>
    %cst_127 = arith.constant 0.353553385 : f32
    %347 = vector.broadcast %cst_127 : f32 to vector<8x8xf32>
    %348 = arith.mulf %346, %347 : vector<8x8xf32>
    %cst_128 = arith.constant dense<0xFF800000> : vector<8xf32>
    %349 = vector.multi_reduction <maximumf>, %348, %cst_128 [1] : vector<8x8xf32> to vector<8xf32>
    %350 = vector.shape_cast %349 : vector<8xf32> to vector<8x1xf32>
    %351 = vector.broadcast %350 : vector<8x1xf32> to vector<8x8xf32>
    %352 = arith.subf %348, %351 : vector<8x8xf32>
    %353 = math.exp %352 : vector<8x8xf32>
    %cst_129 = arith.constant dense<0.000000e+00> : vector<8xf32>
    %354 = vector.multi_reduction <add>, %353, %cst_129 [1] : vector<8x8xf32> to vector<8xf32>
    %355 = vector.shape_cast %354 : vector<8xf32> to vector<8x1xf32>
    %356 = tpu.reciprocal %355 {approx = true} : vector<8x1xf32> -> vector<8x1xf32>
    %357 = vector.broadcast %356 : vector<8x1xf32> to vector<8x8xf32>
    %358 = arith.mulf %353, %357 : vector<8x8xf32>
    %cst_130 = arith.constant dense<0.000000e+00> : vector<8x8xf32>
    %359 = tpu.matmul %358, %344, %cst_130 {dimension_numbers = #tpu.dot_dimension_numbers<[1], [0], [0], [1], [0, 0, 1, 1], [], []>} : vector<8x8xf32>, vector<8x8xf32>, vector<8x8xf32> -> vector<8x8xf32>
    %c8_131 = arith.constant 8 : index
    %c8_132 = arith.constant 8 : index
    %360 = vector.load %arg9[%c8_131, %c8_132] : memref<16x32xf32, #tpu.memory_space<vmem>>, vector<8x8xf32>
    tpu.vector_store %arg9[%c8_131, %c8_132], %359 {strides = array<i32>} : memref<16x32xf32, #tpu.memory_space<vmem>>, vector<8x8xf32>,
    %361 = vector.extract_strided_slice %322 {offsets = [0, 16], sizes = [8, 8], strides = [1, 1]} : vector<8x96xf32> to vector<8x8xf32>
    %362 = vector.extract_strided_slice %322 {offsets = [0, 48], sizes = [8, 8], strides = [1, 1]} : vector<8x96xf32> to vector<8x8xf32>
    %363 = vector.extract_strided_slice %322 {offsets = [0, 80], sizes = [8, 8], strides = [1, 1]} : vector<8x96xf32> to vector<8x8xf32>
    %364 = tpu.transpose %362, [1, 0] : vector<8x8xf32> -> vector<8x8xf32>
    %cst_133 = arith.constant dense<0.000000e+00> : vector<8x8xf32>
    %365 = tpu.matmul %361, %364, %cst_133 {dimension_numbers = #tpu.dot_dimension_numbers<[1], [0], [0], [1], [0, 0, 1, 1], [], []>} : vector<8x8xf32>, vector<8x8xf32>, vector<8x8xf32> -> vector<8x8xf32>
    %cst_134 = arith.constant 0.353553385 : f32
    %366 = vector.broadcast %cst_134 : f32 to vector<8x8xf32>
    %367 = arith.mulf %365, %366 : vector<8x8xf32>
    %cst_135 = arith.constant dense<0xFF800000> : vector<8xf32>
    %368 = vector.multi_reduction <maximumf>, %367, %cst_135 [1] : vector<8x8xf32> to vector<8xf32>
    %369 = vector.shape_cast %368 : vector<8xf32> to vector<8x1xf32>
    %370 = vector.broadcast %369 : vector<8x1xf32> to vector<8x8xf32>
    %371 = arith.subf %367, %370 : vector<8x8xf32>
    %372 = math.exp %371 : vector<8x8xf32>
    %cst_136 = arith.constant dense<0.000000e+00> : vector<8xf32>
    %373 = vector.multi_reduction <add>, %372, %cst_136 [1] : vector<8x8xf32> to vector<8xf32>
    %374 = vector.shape_cast %373 : vector<8xf32> to vector<8x1xf32>
    %375 = tpu.reciprocal %374 {approx = true} : vector<8x1xf32> -> vector<8x1xf32>
    %376 = vector.broadcast %375 : vector<8x1xf32> to vector<8x8xf32>
    %377 = arith.mulf %372, %376 : vector<8x8xf32>
    %cst_137 = arith.constant dense<0.000000e+00> : vector<8x8xf32>
    %378 = tpu.matmul %377, %363, %cst_137 {dimension_numbers = #tpu.dot_dimension_numbers<[1], [0], [0], [1], [0, 0, 1, 1], [], []>} : vector<8x8xf32>, vector<8x8xf32>, vector<8x8xf32> -> vector<8x8xf32>
    %c8_138 = arith.constant 8 : index
    %c16_139 = arith.constant 16 : index
    %379 = vector.load %arg9[%c8_138, %c16_139] : memref<16x32xf32, #tpu.memory_space<vmem>>, vector<8x8xf32>
    tpu.vector_store %arg9[%c8_138, %c16_139], %378 {strides = array<i32>} : memref<16x32xf32, #tpu.memory_space<vmem>>, vector<8x8xf32>,
    %380 = vector.extract_strided_slice %322 {offsets = [0, 24], sizes = [8, 8], strides = [1, 1]} : vector<8x96xf32> to vector<8x8xf32>
    %381 = vector.extract_strided_slice %322 {offsets = [0, 56], sizes = [8, 8], strides = [1, 1]} : vector<8x96xf32> to vector<8x8xf32>
    %382 = vector.extract_strided_slice %322 {offsets = [0, 88], sizes = [8, 8], strides = [1, 1]} : vector<8x96xf32> to vector<8x8xf32>
    %383 = tpu.transpose %381, [1, 0] : vector<8x8xf32> -> vector<8x8xf32>
    %cst_140 = arith.constant dense<0.000000e+00> : vector<8x8xf32>
    %384 = tpu.matmul %380, %383, %cst_140 {dimension_numbers = #tpu.dot_dimension_numbers<[1], [0], [0], [1], [0, 0, 1, 1], [], []>} : vector<8x8xf32>, vector<8x8xf32>, vector<8x8xf32> -> vector<8x8xf32>
    %cst_141 = arith.constant 0.353553385 : f32
    %385 = vector.broadcast %cst_141 : f32 to vector<8x8xf32>
    %386 = arith.mulf %384, %385 : vector<8x8xf32>
    %cst_142 = arith.constant dense<0xFF800000> : vector<8xf32>
    %387 = vector.multi_reduction <maximumf>, %386, %cst_142 [1] : vector<8x8xf32> to vector<8xf32>
    %388 = vector.shape_cast %387 : vector<8xf32> to vector<8x1xf32>
    %389 = vector.broadcast %388 : vector<8x1xf32> to vector<8x8xf32>
    %390 = arith.subf %386, %389 : vector<8x8xf32>
    %391 = math.exp %390 : vector<8x8xf32>
    %cst_143 = arith.constant dense<0.000000e+00> : vector<8xf32>
    %392 = vector.multi_reduction <add>, %391, %cst_143 [1] : vector<8x8xf32> to vector<8xf32>
    %393 = vector.shape_cast %392 : vector<8xf32> to vector<8x1xf32>
    %394 = tpu.reciprocal %393 {approx = true} : vector<8x1xf32> -> vector<8x1xf32>
    %395 = vector.broadcast %394 : vector<8x1xf32> to vector<8x8xf32>
    %396 = arith.mulf %391, %395 : vector<8x8xf32>
    %cst_144 = arith.constant dense<0.000000e+00> : vector<8x8xf32>
    %397 = tpu.matmul %396, %382, %cst_144 {dimension_numbers = #tpu.dot_dimension_numbers<[1], [0], [0], [1], [0, 0, 1, 1], [], []>} : vector<8x8xf32>, vector<8x8xf32>, vector<8x8xf32> -> vector<8x8xf32>
    %c8_145 = arith.constant 8 : index
    %c24_146 = arith.constant 24 : index
    %398 = vector.load %arg9[%c8_145, %c24_146] : memref<16x32xf32, #tpu.memory_space<vmem>>, vector<8x8xf32>
    tpu.vector_store %arg9[%c8_145, %c24_146], %397 {strides = array<i32>} : memref<16x32xf32, #tpu.memory_space<vmem>>, vector<8x8xf32>,
    %c0_147 = arith.constant 0 : index
    %c0_148 = arith.constant 0 : index
    %399 = vector.load %arg9[%c0_147, %c0_148] : memref<16x32xf32, #tpu.memory_space<vmem>>, vector<16x32xf32>
    %c1_149 = arith.constant 1 : index
    %c0_150 = arith.constant 0 : index
    %c0_151 = arith.constant 0 : index
    %400 = vector.load %arg3[%c1_149, %c0_150, %c0_151] : memref<2x32x32xf32, #tpu.memory_space<vmem>>, vector<1x32x32xf32>
    %401 = vector.shape_cast %400 : vector<1x32x32xf32> to vector<32x32xf32>
    %cst_152 = arith.constant dense<0.000000e+00> : vector<16x32xf32>
    %402 = tpu.matmul %399, %401, %cst_152 {dimension_numbers = #tpu.dot_dimension_numbers<[1], [0], [0], [1], [0, 0, 1, 1], [], []>} : vector<16x32xf32>, vector<32x32xf32>, vector<16x32xf32> -> vector<16x32xf32>
    %403 = vector.broadcast %233 : vector<1x32xf32> to vector<16x32xf32>
    %404 = arith.addf %402, %403 : vector<16x32xf32>
    %405 = arith.addf %229, %404 : vector<16x32xf32>
    %cst_153 = arith.constant dense<0.000000e+00> : vector<16xf32>
    %406 = vector.multi_reduction <add>, %405, %cst_153 [1] : vector<16x32xf32> to vector<16xf32>
    %407 = vector.shape_cast %406 : vector<16xf32> to vector<16x1xf32>
    %cst_154 = arith.constant 3.200000e+01 : f32
    %408 = vector.broadcast %cst_154 : f32 to vector<16x1xf32>
    %409 = arith.divf %407, %408 : vector<16x1xf32>
    %410 = vector.broadcast %409 : vector<16x1xf32> to vector<16x32xf32>
    %411 = arith.subf %405, %410 : vector<16x32xf32>
    %412 = arith.mulf %411, %411 : vector<16x32xf32>
    %cst_155 = arith.constant dense<0.000000e+00> : vector<16xf32>
    %413 = vector.multi_reduction <add>, %412, %cst_155 [1] : vector<16x32xf32> to vector<16xf32>
    %414 = vector.shape_cast %413 : vector<16xf32> to vector<16x1xf32>
    %cst_156 = arith.constant 3.100000e+01 : f32
    %415 = vector.broadcast %cst_156 : f32 to vector<16x1xf32>
    %416 = arith.divf %414, %415 : vector<16x1xf32>
    %417 = math.sqrt %416 : vector<16x1xf32>
    %418 = vector.broadcast %234 : vector<1x32xf32> to vector<16x32xf32>
    %419 = arith.mulf %418, %411 : vector<16x32xf32>
    %cst_157 = arith.constant 9.99999997E-7 : f32
    %420 = vector.broadcast %cst_157 : f32 to vector<16x1xf32>
    %421 = arith.addf %417, %420 : vector<16x1xf32>
    %422 = vector.broadcast %421 : vector<16x1xf32> to vector<16x32xf32>
    %423 = arith.divf %419, %422 : vector<16x32xf32>
    %424 = vector.broadcast %235 : vector<1x32xf32> to vector<16x32xf32>
    %425 = arith.addf %423, %424 : vector<16x32xf32>
    %c1_158 = arith.constant 1 : index
    %c0_159 = arith.constant 0 : index
    %c0_160 = arith.constant 0 : index
    %426 = vector.load %arg4[%c1_158, %c0_159, %c0_160] : memref<2x32x64xf32, #tpu.memory_space<vmem>>, vector<1x32x64xf32>
    %427 = vector.shape_cast %426 : vector<1x32x64xf32> to vector<32x64xf32>
    %cst_161 = arith.constant dense<0.000000e+00> : vector<16x64xf32>
    %428 = tpu.matmul %425, %427, %cst_161 {dimension_numbers = #tpu.dot_dimension_numbers<[1], [0], [0], [1], [0, 0, 1, 1], [], []>} : vector<16x32xf32>, vector<32x64xf32>, vector<16x64xf32> -> vector<16x64xf32>
    %429 = vector.broadcast %236 : vector<1x64xf32> to vector<16x64xf32>
    %430 = arith.addf %428, %429 : vector<16x64xf32>
    %cst_162 = arith.constant 0.000000e+00 : f32
    %431 = vector.broadcast %cst_162 : f32 to vector<16x64xf32>
    %432 = arith.maximumf %430, %431 : vector<16x64xf32>
    %c1_163 = arith.constant 1 : index
    %c0_164 = arith.constant 0 : index
    %c0_165 = arith.constant 0 : index
    %433 = vector.load %arg5[%c1_163, %c0_164, %c0_165] : memref<2x64x32xf32, #tpu.memory_space<vmem>>, vector<1x64x32xf32>
    %434 = vector.shape_cast %433 : vector<1x64x32xf32> to vector<64x32xf32>
    %cst_166 = arith.constant dense<0.000000e+00> : vector<16x32xf32>
    %435 = tpu.matmul %432, %434, %cst_166 {dimension_numbers = #tpu.dot_dimension_numbers<[1], [0], [0], [1], [0, 0, 1, 1], [], []>} : vector<16x64xf32>, vector<64x32xf32>, vector<16x32xf32> -> vector<16x32xf32>
    %436 = vector.broadcast %237 : vector<1x32xf32> to vector<16x32xf32>
    %437 = arith.addf %435, %436 : vector<16x32xf32>
    %438 = arith.addf %425, %437 : vector<16x32xf32>
    %cst_167 = arith.constant dense<0.000000e+00> : vector<16xf32>
    %439 = vector.multi_reduction <add>, %438, %cst_167 [1] : vector<16x32xf32> to vector<16xf32>
    %440 = vector.shape_cast %439 : vector<16xf32> to vector<16x1xf32>
    %cst_168 = arith.constant 3.200000e+01 : f32
    %441 = vector.broadcast %cst_168 : f32 to vector<16x1xf32>
    %442 = arith.divf %440, %441 : vector<16x1xf32>
    %443 = vector.broadcast %442 : vector<16x1xf32> to vector<16x32xf32>
    %444 = arith.subf %438, %443 : vector<16x32xf32>
    %445 = arith.mulf %444, %444 : vector<16x32xf32>
    %cst_169 = arith.constant dense<0.000000e+00> : vector<16xf32>
    %446 = vector.multi_reduction <add>, %445, %cst_169 [1] : vector<16x32xf32> to vector<16xf32>
    %447 = vector.shape_cast %446 : vector<16xf32> to vector<16x1xf32>
    %cst_170 = arith.constant 3.100000e+01 : f32
    %448 = vector.broadcast %cst_170 : f32 to vector<16x1xf32>
    %449 = arith.divf %447, %448 : vector<16x1xf32>
    %450 = math.sqrt %449 : vector<16x1xf32>
    %451 = vector.broadcast %238 : vector<1x32xf32> to vector<16x32xf32>
    %452 = arith.mulf %451, %444 : vector<16x32xf32>
    %cst_171 = arith.constant 9.99999997E-7 : f32
    %453 = vector.broadcast %cst_171 : f32 to vector<16x1xf32>
    %454 = arith.addf %450, %453 : vector<16x1xf32>
    %455 = vector.broadcast %454 : vector<16x1xf32> to vector<16x32xf32>
    %456 = arith.divf %452, %455 : vector<16x32xf32>
    %457 = vector.broadcast %239 : vector<1x32xf32> to vector<16x32xf32>
    %458 = arith.addf %456, %457 : vector<16x32xf32>
    %c0_172 = arith.constant 0 : index
    %c0_173 = arith.constant 0 : index
    %459 = vector.load %arg7[%c0_172, %c0_173] : memref<2x32xf32, #tpu.memory_space<vmem>>, vector<1x32xf32>
    %c1_174 = arith.constant 1 : index
    %c0_175 = arith.constant 0 : index
    %460 = vector.load %arg7[%c1_174, %c0_175] : memref<2x32xf32, #tpu.memory_space<vmem>>, vector<1x32xf32>
    %cst_176 = arith.constant dense<0.000000e+00> : vector<16xf32>
    %461 = vector.multi_reduction <add>, %458, %cst_176 [1] : vector<16x32xf32> to vector<16xf32>
    %462 = vector.shape_cast %461 : vector<16xf32> to vector<16x1xf32>
    %cst_177 = arith.constant 3.200000e+01 : f32
    %463 = vector.broadcast %cst_177 : f32 to vector<16x1xf32>
    %464 = arith.divf %462, %463 : vector<16x1xf32>
    %465 = vector.broadcast %464 : vector<16x1xf32> to vector<16x32xf32>
    %466 = arith.subf %458, %465 : vector<16x32xf32>
    %467 = arith.mulf %466, %466 : vector<16x32xf32>
    %cst_178 = arith.constant dense<0.000000e+00> : vector<16xf32>
    %468 = vector.multi_reduction <add>, %467, %cst_178 [1] : vector<16x32xf32> to vector<16xf32>
    %469 = vector.shape_cast %468 : vector<16xf32> to vector<16x1xf32>
    %cst_179 = arith.constant 3.100000e+01 : f32
    %470 = vector.broadcast %cst_179 : f32 to vector<16x1xf32>
    %471 = arith.divf %469, %470 : vector<16x1xf32>
    %472 = math.sqrt %471 : vector<16x1xf32>
    %473 = vector.broadcast %459 : vector<1x32xf32> to vector<16x32xf32>
    %474 = arith.mulf %473, %466 : vector<16x32xf32>
    %cst_180 = arith.constant 9.99999997E-7 : f32
    %475 = vector.broadcast %cst_180 : f32 to vector<16x1xf32>
    %476 = arith.addf %472, %475 : vector<16x1xf32>
    %477 = vector.broadcast %476 : vector<16x1xf32> to vector<16x32xf32>
    %478 = arith.divf %474, %477 : vector<16x32xf32>
    %479 = vector.broadcast %460 : vector<1x32xf32> to vector<16x32xf32>
    %480 = arith.addf %478, %479 : vector<16x32xf32>
    %c0_181 = arith.constant 0 : index
    %c0_182 = arith.constant 0 : index
    %481 = vector.load %arg8[%c0_181, %c0_182] : memref<16x32xf32, #tpu.memory_space<vmem>>, vector<16x32xf32>
    tpu.vector_store %arg8[%c0_181, %c0_182], %480 {strides = array<i32>} : memref<16x32xf32, #tpu.memory_space<vmem>>, vector<16x32xf32>,
    return
  }
  func.func @transform_0(%arg0: i32) -> (i32, i32) {
    %c0_i32 = arith.constant 0 : i32
    %c0_i32_0 = arith.constant 0 : i32
    %c0_i32_1 = arith.constant 0 : i32
    return %c0_i32, %c0_i32_0 : i32, i32
  }
  func.func @transform_1(%arg0: i32) -> (i32, i32, i32) {
    %c0_i32 = arith.constant 0 : i32
    %c0_i32_0 = arith.constant 0 : i32
    %c0_i32_1 = arith.constant 0 : i32
    %c0_i32_2 = arith.constant 0 : i32
    return %c0_i32, %c0_i32_0, %c0_i32_1 : i32, i32, i32
  }
  func.func @transform_2(%arg0: i32) -> (i32, i32, i32) {
    %c0_i32 = arith.constant 0 : i32
    %c0_i32_0 = arith.constant 0 : i32
    %c0_i32_1 = arith.constant 0 : i32
    %c0_i32_2 = arith.constant 0 : i32
    return %c0_i32, %c0_i32_0, %c0_i32_1 : i32, i32, i32
  }
  func.func @transform_3(%arg0: i32) -> (i32, i32, i32) {
    %c0_i32 = arith.constant 0 : i32
    %c0_i32_0 = arith.constant 0 : i32
    %c0_i32_1 = arith.constant 0 : i32
    %c0_i32_2 = arith.constant 0 : i32
    return %c0_i32, %c0_i32_0, %c0_i32_1 : i32, i32, i32
  }
  func.func @transform_4(%arg0: i32) -> (i32, i32, i32) {
    %c0_i32 = arith.constant 0 : i32
    %c0_i32_0 = arith.constant 0 : i32
    %c0_i32_1 = arith.constant 0 : i32
    %c0_i32_2 = arith.constant 0 : i32
    return %c0_i32, %c0_i32_0, %c0_i32_1 : i32, i32, i32
  }
  func.func @transform_5(%arg0: i32) -> (i32, i32, i32) {
    %c0_i32 = arith.constant 0 : i32
    %c0_i32_0 = arith.constant 0 : i32
    %c0_i32_1 = arith.constant 0 : i32
    %c0_i32_2 = arith.constant 0 : i32
    return %c0_i32, %c0_i32_0, %c0_i32_1 : i32, i32, i32
  }
  func.func @transform_6(%arg0: i32) -> (i32, i32) {
    %c0_i32 = arith.constant 0 : i32
    %c0_i32_0 = arith.constant 0 : i32
    %c0_i32_1 = arith.constant 0 : i32
    return %c0_i32, %c0_i32_0 : i32, i32
  }
  func.func @transform_7(%arg0: i32) -> (i32, i32) {
    %c0_i32 = arith.constant 0 : i32
    %c0_i32_0 = arith.constant 0 : i32
    %c0_i32_1 = arith.constant 0 : i32
    return %c0_i32, %c0_i32_0 : i32, i32
  }
}

</mosaic_0001>

<bundles_post_ra>
// kernel: tpu_custom_call.1
= control target key start
LH: loop header
LB: loop body
LE: loop exit
PB: predicated region body
PF: predicated region fallthrough
CT: control target
= control target key end

     0   :  { %12 = vsyncpa [#allocation4], 0  ;;  %s5197_s0 = inlined_call_operand.hbm [shape: f32[16,32], index: 0, kind: input, shape index: {}]   ;;  %s5198_s1 = inlined_call_operand.vmem [shape: f32[2,32,96], index: 1, kind: input, shape index: {}]   ;;  %s5199_s2 = inlined_call_operand.vmem [shape: f32[2,32,32], index: 2, kind: input, shape index: {}]   ;;  %s5200_s3 = inlined_call_operand.vmem [shape: f32[2,32,64], index: 3, kind: input, shape index: {}]   ;;  %s5201_s4 = inlined_call_operand.vmem [shape: f32[2,64,32], index: 4, kind: input, shape index: {}]   ;;  %s5202_s5 = inlined_call_operand.vmem [shape: f32[2,8,96], index: 5, kind: input, shape index: {}]   ;;  %s5203_s6 = inlined_call_operand.vmem [shape: f32[2,32], index: 6, kind: input, shape index: {}]   ;;  %s5204_s7 = inlined_call_operand.hbm [shape: f32[16,32], index: 7, kind: output, shape index: {}]  }
   0x1   :  { %13 = vsyncpa [#allocation5], 0  ;;  %s4513_s24 = smov [#allocation3]   ;;  %s4465_s28 = scalar_lea.hbm %s5197_s0, 256 }
   0x2   :  { %s19_s25 = sshll.u32 %s4513_s24, 4  ;;  %p4466_p0 = scmp.ne.s32.totalorder %s5197_s0, %s4465_s28  ;;  %s20_s25 = int_to_ptr.vmem [resolvable:$true] %s19_s25 }
   0x3   :  { %p4469_p1 = scmp.lt.u32.totalorder %s4465_s28, %s5197_s0 }
   0x5   :  { %p4471_p2 = pnand %p4469_p1, %p4466_p0 }
   0x7   :  { %4474 = shalt.err (!%p4471_p2)
}
   0x8   :  { %s4475_s10 = scalar_lea.vmem %s20_s25, 256  ;;  %p4480_p4 = scmp.lt.s32.totalorder %s20_s25, %s20_s25 }
   0x9   :  { %p4476_p3 = scmp.ne.s32.totalorder %s20_s25, %s4475_s10  ;;  %p4481_p5 = scmp.lt.s32.totalorder %s4475_s10, %s4475_s10 }
   0xb   :  { %p4482_p6 = por %p4481_p5, %p4480_p4 }
   0xd   :  { %p4483_p7 = pnand %p4482_p6, %p4476_p3 }
   0xf   :  { %4486 = shalt.err (!%p4483_p7)
}
  0x10   :  { %s5205_s11 = smov 128   ;;  %s4515_s12 = smov 8  }
  0x11   :  { %25 = dma.hbm_to_vmem [thread:$0]  %s5197_s0, 256, %s20_s25, [#allocation4], %s5205_s11, %s5205_s11, %s4515_s12  }
  0x12   :  { %4509 = dma.done.wait [#allocation4], 256  }
  0x13   :  { %4510 = vsyncadd [#allocation4], 4294967040  ;;  %vm52_vm0 = vcmask 261120   ;;  %v44_v0 = vld [vmem:[%s5198_s1] sm:$0xff]  ;;  %v45_v1 = vld [vmem:[%s5198_s1 + $0x8] sm:$0xff]  ;;  %v4516_v8 = vmov 0.0   ;;  %v48_v9 = vlaneseq }
  0x14   :  { %v46_v2 = vld [vmem:[%s5198_s1 + $0x10] sm:$0xff]  ;;  %v4262_v3 = vpack.c.bf16 %v45_v1, %v44_v0  ;;  %v47_v4 = vld [vmem:[%s5198_s1 + $0x18] sm:$0xff]  ;;  %4019 = vmatprep.subr.mxu0 %v4516_v8  ;;  %vm4517_vm1 = vmmov 0   ;;  %v4619_v12 = vld [vmem:[%s5202_s5] sm:$0xff]  ;;  %s4518_s24 = smov 120   ;;  %s4519_s25 = smov 96  }
  0x15   :  { %v4599_v5 = vld [vmem:[#allocation3] sm:$0xff]  ;;  %v4266_v6 = vpack.c.bf16 %v47_v4, %v46_v2  ;;  %v4603_v7 = vld [vmem:[#allocation3 + $0x8] sm:$0xff]  ;;  %v4609_v10 = vshrl.u32 %v48_v9, 7  ;;  %4021 = vmatprep.mubr.msk.f32.mxu0 %vm4517_vm1, %v4516_v8  ;;  %s4520_s26 = smov 80   ;;  %s4521_s27 = smov 88   ;;  %vm137_vm2 = vcmask 64512  }
  0x16   :  { %4006 = vmatprep.mubr.msk.f32.mxu1 %vm52_vm0, %v4599_v5  ;;  %4263 = vmatprep.subr.bf16.mxu1 %v4262_v3  ;;  %s4522_s28 = smov 72   ;;  %s4523_s29 = smov 112   ;;  %vm471_vm3 = vcmask 130112   ;;  %vm643_vm4 = vcmask 195712   ;;  %vm815_vm5 = vcmask 261312   ;;  %vm1746_vm10 = vcmask 523264  }
  0x17   :  { %4265 = vmatpush3.bf16.msra.mxu1 %v4262_v3  ;;  %v50_v11 = vsub.s32 0, %v4609_v10  ;;  %s4524_s30 = smov 104   ;;  %s4525_s8 = smov 56  }
  0x18   :  { %4267 = vmatprep.subr.bf16.mxu1 %v4266_v6  ;;  %s4526_s9 = smov 64   ;;  %s4527_s10 = smov 40  }
  0x19   :  { %v51_v13 = vrot.slane %v4619_v12, %v50_v11  ;;  %s4528_s13 = smov 48   ;;  %s4529_s14 = smov 16  }
  0x1a   :  { %s4530_s15 = smov 24  }
  0x1b   :  { %4269 = vmatpush3.bf16.msra.mxu1 %v4266_v6 }
  0x1c   :  { %4009 = vmatprep.subr.mxu1 %v4516_v8 }
  0x1e   :  { %4007 = vmatmul.mubr.msk.f32.vlgmr.msra.gmra.mrb[0].mxu1 %vm52_vm0, %v4603_v7 }
  0x1f   :  { %4011 = vmatprep.mubr.msk.f32.mxu1 %vm4517_vm1, %v4516_v8 }
  0xf1   :  { %v4008_v14 = vpop.f32.mrb[0].mxu1 }
  0xf2   :  { %v125_v15 = vpop.f32.mrb[1].mxu1  ;;  %v4638_v17 = vadd.f32 %v4008_v14, %v51_v13 }
  0xf3   :  { %v4624_v16 = vadd.f32 %v125_v15, %v51_v13 }
  0xf5   :  { %301 = vrot.lane.b32.xlu1 %v4624_v16, %s4518_s24  ;;  %135 = vrot.lane.b32.xlu0 %v4624_v16, %s4519_s25 }
  0xf9   :  { %475 = vrot.lane.b32.xlu1 %v4624_v16, %s4520_s26  ;;  %303 = vrot.lane.b32.xlu0 %v4624_v16, %s4521_s27 }
  0xfd   :  { %647 = vrot.lane.b32.xlu1 %v4624_v16, %s4522_s28  ;;  %473 = vrot.lane.b32.xlu0 %v4624_v16, %s4523_s29 }
 0x101   :  { %818 = vrot.lane.b32.xlu1 %v4638_v17, %s4519_s25  ;;  %645 = vrot.lane.b32.xlu0 %v4624_v16, %s4524_s30 }
 0x105   :  { %983 = vrot.lane.b32.xlu1 %v4638_v17, %s4518_s24  ;;  %985 = vrot.lane.b32.xlu0 %v4638_v17, %s4521_s27 }
 0x109   :  { %1154 = vrot.lane.b32.xlu1 %v4638_v17, %s4523_s29  ;;  %1156 = vrot.lane.b32.xlu0 %v4638_v17, %s4520_s26 }
 0x10d   :  { %1325 = vrot.lane.b32.xlu1 %v4638_v17, %s4524_s30  ;;  %1327 = vrot.lane.b32.xlu0 %v4638_v17, %s4522_s28 }
 0x111   :  { %391 = vrot.lane.b32.xlu1 %v4624_v16, %s4525_s8  ;;  %224 = vrot.lane.b32.xlu0 %v4624_v16, %s4526_s9 }
 0x167   :  { %v302_v18 = vpop.permute.xlu1 %301  ;;  %v136_v19 = vpop.permute.xlu0 %135 }
 0x168   :  { %4010 = vmatpush3.xpose.msk.msra.mxu1 %vm137_vm2, %v136_v19 }
 0x169   :  { %4014 = vmatprep.subr.mxu1 %v4516_v8 }
 0x16b   :  { %v476_v20 = vpop.permute.xlu1 %475  ;;  %4012 = vmatmul.mubr.msk.f32.vlgmr.msra.gmra.mrb[2].mxu1 %vm137_vm2, %v4624_v16  ;;  %v304_v21 = vpop.permute.xlu0 %303 }
 0x16c   :  { %4020 = vmatpush3.xpose.msk.msra.mxu0 %vm137_vm2, %v304_v21  ;;  %4016 = vmatprep.mubr.msk.f32.mxu1 %vm4517_vm1, %v4516_v8 }
 0x16d   :  { %4029 = vmatprep.subr.mxu0 %v4516_v8 }
 0x16f   :  { %v648_v22 = vpop.permute.xlu1 %647  ;;  %4022 = vmatmul.mubr.msk.f32.vlgmr.msra.gmra.mrb[0].mxu0 %vm137_vm2, %v302_v18  ;;  %v474_v23 = vpop.permute.xlu0 %473 }
 0x170   :  { %4030 = vmatpush3.xpose.msk.msra.mxu0 %vm137_vm2, %v476_v20  ;;  %4031 = vmatprep.mubr.msk.f32.mxu0 %vm4517_vm1, %v4516_v8 }
 0x171   :  { %4039 = vmatprep.subr.mxu0 %v4516_v8 }
 0x173   :  { %4032 = vmatmul.mubr.msk.f32.vlgmr.msra.gmra.mrb[2].mxu0 %vm137_vm2, %v474_v23  ;;  %v646_v24 = vpop.permute.xlu0 %645  ;;  %v819_v25 = vpop.permute.xlu1 %818 }
 0x174   :  { %4040 = vmatpush3.xpose.msk.msra.mxu0 %vm137_vm2, %v648_v22  ;;  %4041 = vmatprep.mubr.msk.f32.mxu0 %vm4517_vm1, %v4516_v8 }
 0x175   :  { %4049 = vmatprep.subr.mxu0 %v4516_v8 }
 0x177   :  { %4042 = vmatmul.mubr.msk.f32.vlgmr.msra.gmra.mrb[4].mxu0 %vm137_vm2, %v646_v24  ;;  %v986_v26 = vpop.permute.xlu0 %985  ;;  %v984_v27 = vpop.permute.xlu1 %983 }
 0x178   :  { %4050 = vmatpush3.xpose.msk.msra.mxu0 %vm137_vm2, %v819_v25  ;;  %4051 = vmatprep.mubr.msk.f32.mxu0 %vm4517_vm1, %v4516_v8 }
 0x179   :  { %4059 = vmatprep.subr.mxu0 %v4516_v8 }
 0x17b   :  { %4052 = vmatmul.mubr.msk.f32.vlgmr.msra.gmra.mrb[6].mxu0 %vm137_vm2, %v4638_v17  ;;  %v1157_v28 = vpop.permute.xlu0 %1156  ;;  %v1155_v30 = vpop.permute.xlu1 %1154 }
 0x17c   :  { %4060 = vmatpush3.xpose.msk.msra.mxu0 %vm137_vm2, %v986_v26  ;;  %4061 = vmatprep.mubr.msk.f32.mxu0 %vm4517_vm1, %v4516_v8 }
 0x17d   :  { %4069 = vmatprep.subr.mxu0 %v4516_v8 }
 0x17f   :  { %4062 = vmatmul.mubr.msk.f32.vlgmr.msra.gmra.mrb[8].mxu0 %vm137_vm2, %v984_v27  ;;  %v1328_v29 = vpop.permute.xlu0 %1327  ;;  %v1326_v32 = vpop.permute.xlu1 %1325 }
 0x180   :  { %4070 = vmatpush3.xpose.msk.msra.mxu0 %vm137_vm2, %v1157_v28  ;;  %4071 = vmatprep.mubr.msk.f32.mxu0 %vm4517_vm1, %v4516_v8 }
 0x181   :  { %4079 = vmatprep.subr.mxu0 %v4516_v8 }
 0x183   :  { %4072 = vmatmul.mubr.msk.f32.vlgmr.msra.gmra.mrb[10].mxu0 %vm137_vm2, %v1155_v30  ;;  %v225_v31 = vpop.permute.xlu0 %224  ;;  %v4712_v1 = vpop.permute.xlu1 %391 }
 0x184   :  { %4015 = vmatpush3.msra.mxu1 %v225_v31  ;;  %4080 = vmatpush3.xpose.msk.msra.mxu0 %vm137_vm2, %v1328_v29 }
 0x185   :  { %4081 = vmatprep.mubr.msk.f32.mxu0 %vm4517_vm1, %v4516_v8  ;;  %4024 = vmatprep.subr.mxu1 %v4516_v8 }
 0x187   :  { %4082 = vmatmul.mubr.msk.f32.vlgmr.msra.gmra.mrb[12].mxu0 %vm137_vm2, %v1326_v32 }
 0x23e   :  { %v208_v33 = vpop.f32.mrb[2].mxu1 }
 0x23f   :  { %v212_v34 = vmul.f32 0.35355338, %v208_v33  ;;  %v4013_v35 = vpop.f32.mrb[3].mxu1 }
 0x241   :  { %v213_v36 = vsel %vm137_vm2, %v212_v34, -inf }
 0x242   :  { %214 = vmax.xlane.f32.xlu0 %v213_v36  ;;  %v375_v37 = vpop.f32.mrb[0].mxu0 }
 0x243   :  { %v379_v38 = vmul.f32 0.35355338, %v375_v37  ;;  %v4023_v39 = vpop.f32.mrb[1].mxu0 }
 0x245   :  { %v380_v40 = vsel %vm137_vm2, %v379_v38, -inf }
 0x246   :  { %381 = vmax.xlane.f32.xlu1 %v380_v40  ;;  %v547_v41 = vpop.f32.mrb[2].mxu0 }
 0x247   :  { %v551_v42 = vmul.f32 0.35355338, %v547_v41  ;;  %v4033_v43 = vpop.f32.mrb[3].mxu0 }
 0x249   :  { %v552_v44 = vsel %vm137_vm2, %v551_v42, -inf }
 0x24a   :  { %553 = vmax.xlane.f32.xlu0 %v552_v44  ;;  %v719_v45 = vpop.f32.mrb[4].mxu0 }
 0x24b   :  { %v723_v46 = vmul.f32 0.35355338, %v719_v45  ;;  %v4043_v47 = vpop.f32.mrb[5].mxu0 }
 0x24d   :  { %v724_v48 = vsel %vm137_vm2, %v723_v46, -inf }
 0x24e   :  { %725 = vmax.xlane.f32.xlu0 %v724_v48  ;;  %v890_v49 = vpop.f32.mrb[6].mxu0 }
 0x24f   :  { %v894_v50 = vmul.f32 0.35355338, %v890_v49  ;;  %v4053_v51 = vpop.f32.mrb[7].mxu0 }
 0x251   :  { %v895_v52 = vsel %vm137_vm2, %v894_v50, -inf }
 0x252   :  { %896 = vmax.xlane.f32.xlu1 %v895_v52  ;;  %v1057_v53 = vpop.f32.mrb[8].mxu0 }
 0x253   :  { %v1061_v54 = vmul.f32 0.35355338, %v1057_v53  ;;  %v4063_v55 = vpop.f32.mrb[9].mxu0 }
 0x255   :  { %v1062_v56 = vsel %vm137_vm2, %v1061_v54, -inf }
 0x256   :  { %1063 = vmax.xlane.f32.xlu0 %v1062_v56  ;;  %v1228_v57 = vpop.f32.mrb[10].mxu0 }
 0x257   :  { %v1232_v58 = vmul.f32 0.35355338, %v1228_v57  ;;  %v4073_v59 = vpop.f32.mrb[11].mxu0 }
 0x259   :  { %v1233_v60 = vsel %vm137_vm2, %v1232_v58, -inf }
 0x25a   :  { %1234 = vmax.xlane.f32.xlu1 %v1233_v60  ;;  %v1399_v61 = vpop.f32.mrb[12].mxu0 }
 0x25b   :  { %v1403_v62 = vmul.f32 0.35355338, %v1399_v61  ;;  %v4083_v63 = vpop.f32.mrb[13].mxu0 }
 0x25d   :  { %v1404_v0 = vsel %vm137_vm2, %v1403_v62, -inf }
 0x25e   :  { %1405 = vmax.xlane.f32.xlu0 %v1404_v0 }
 0x26b   :  { %735 = vrot.lane.b32.xlu1 %v4624_v16, %s4527_s10 }
 0x274   :  { %563 = vrot.lane.b32.xlu0 %v4624_v16, %s4528_s13 }
 0x2cf   :  { %v215_v2 = vpop.xlane.xlu0 %214 }
 0x2d0   :  { %v216_v3 = vsub.f32 %v212_v34, %v215_v2 }
 0x2d2   :  { %v217_v4 = vmul.f32 1.442695, %v216_v3 }
 0x2d3   :  { %v382_v6 = vpop.xlane.xlu1 %381 }
 0x2d4   :  { %4361 = vpow2.f32 %v217_v4  ;;  %v383_v9 = vsub.f32 %v379_v38, %v382_v6 }
 0x2d6   :  { %v384_v13 = vmul.f32 1.442695, %v383_v9 }
 0x2d7   :  { %v554_v14 = vpop.xlane.xlu0 %553 }
 0x2d8   :  { %4363 = vpow2.f32 %v384_v13  ;;  %v555_v15 = vsub.f32 %v551_v42, %v554_v14 }
 0x2da   :  { %v556_v18 = vmul.f32 1.442695, %v555_v15 }
 0x2db   :  { %v726_v19 = vpop.xlane.xlu0 %725 }
 0x2dc   :  { %4365 = vpow2.f32 %v556_v18  ;;  %v727_v20 = vsub.f32 %v723_v46, %v726_v19 }
 0x2de   :  { %v4362_v21 = vpop.eup %4361  ;;  %v728_v22 = vmul.f32 1.442695, %v727_v20 }
 0x2df   :  { %v219_v16 = vsel %vm137_vm2, %v4362_v21, 0.0  ;;  %v897_v29 = vpop.xlane.xlu1 %896 }
 0x2e0   :  { %4367 = vpow2.f32 %v728_v22  ;;  %220 = vadd.xlane.f32.xlu1 %v219_v16  ;;  %v898_v30 = vsub.f32 %v894_v50, %v897_v29  ;;  %v1498_v29 = vld [vmem:[%s5199_s2] sm:$0xff] }
 0x2e2   :  { %v4364_v23 = vpop.eup %4363  ;;  %v899_v34 = vmul.f32 1.442695, %v898_v30  ;;  %v1499_v30 = vld [vmem:[%s5199_s2 + $0x8] sm:$0xff] }
 0x2e3   :  { %v386_v24 = vsel %vm137_vm2, %v4364_v23, 0.0  ;;  %v1064_v31 = vpop.xlane.xlu0 %1063 }
 0x2e4   :  { %387 = vadd.xlane.f32.xlu0 %v386_v24  ;;  %v1065_v33 = vsub.f32 %v1061_v54, %v1064_v31  ;;  %4369 = vpow2.f32 %v899_v34  ;;  %v1500_v34 = vld [vmem:[%s5199_s2 + $0x10] sm:$0xff] }
 0x2e6   :  { %v4366_v25 = vpop.eup %4365  ;;  %v1066_v37 = vmul.f32 1.442695, %v1065_v33 }
 0x2e7   :  { %v558_v26 = vsel %vm137_vm2, %v4366_v25, 0.0  ;;  %v1235_v32 = vpop.xlane.xlu1 %1234 }
 0x2e8   :  { %559 = vadd.xlane.f32.xlu1 %v558_v26  ;;  %v1236_v35 = vsub.f32 %v1232_v58, %v1235_v32  ;;  %4371 = vpow2.f32 %v1066_v37  ;;  %v4270_v32 = vpack.c.bf16 %v1499_v30, %v1498_v29 }
 0x2ea   :  { %v4717_v27 = vpop.eup %4367  ;;  %v1237_v38 = vmul.f32 1.442695, %v1236_v35  ;;  %v1501_v35 = vld [vmem:[%s5199_s2 + $0x18] sm:$0xff]  ;;  %4271 = vmatprep.subr.bf16.mxu0 %v4270_v32 }
 0x2eb   :  { %v730_v28 = vsel %vm137_vm2, %v4717_v27, 0.0  ;;  %v1406_v36 = vpop.xlane.xlu0 %1405  ;;  %v736_v49 = vpop.permute.xlu1 %735  ;;  %4273 = vmatpush3.bf16.msra.mxu0 %v4270_v32 }
 0x2ec   :  { %731 = vadd.xlane.f32.xlu0 %v730_v28  ;;  %v1407_v39 = vsub.f32 %v1403_v62, %v1406_v36  ;;  %4373 = vpow2.f32 %v1237_v38  ;;  %v4274_v36 = vpack.c.bf16 %v1501_v35, %v1500_v34 }
 0x2ee   :  { %v1408_v40 = vmul.f32 1.442695, %v1407_v39  ;;  %v4370_v41 = vpop.eup %4369  ;;  %4275 = vmatprep.subr.bf16.mxu0 %v4274_v36 }
 0x2ef   :  { %v901_v43 = vsel %vm137_vm2, %v4370_v41, 0.0  ;;  %v564_v50 = vpop.permute.xlu0 %563  ;;  %4277 = vmatpush3.bf16.msra.mxu0 %v4274_v36 }
 0x2f0   :  { %4375 = vpow2.f32 %v1408_v40 }
 0x2f2   :  { %v4725_v42 = vpop.eup %4371 }
 0x2f3   :  { %v1068_v46 = vsel %vm137_vm2, %v4725_v42, 0.0 }
 0x2f6   :  { %v4728_v44 = vpop.eup %4373 }
 0x2f7   :  { %v1239_v45 = vsel %vm137_vm2, %v4728_v44, 0.0 }
 0x2f9   :  { %1073 = vrot.lane.b32.xlu1 %v4638_v17, %s4525_s8 }
 0x2fa   :  { %v4734_v47 = vpop.eup %4375 }
 0x2fb   :  { %v1410_v48 = vsel %vm137_vm2, %v4734_v47, 0.0 }
 0x302   :  { %906 = vrot.lane.b32.xlu0 %v4638_v17, %s4526_s9 }
 0x31d   :  { %902 = vadd.xlane.f32.xlu1 %v901_v43 }
 0x321   :  { %1240 = vadd.xlane.f32.xlu1 %v1239_v45  ;;  %1069 = vadd.xlane.f32.xlu0 %v1068_v46 }
 0x325   :  { %1411 = vadd.xlane.f32.xlu1 %v1410_v48 }
 0x336   :  { %1415 = vrot.lane.b32.xlu1 %v4638_v17, %s4527_s10 }
 0x337   :  { %1244 = vrot.lane.b32.xlu0 %v4638_v17, %s4528_s13 }
 0x36d   :  { %v221_v51 = vpop.xlane.xlu1 %220 }
 0x36e   :  { %4377 = vrcp.f32 %v221_v51  ;;  %v1504_v51 = vsub.s32 1, %v4609_v10 }
 0x371   :  { %v388_v52 = vpop.xlane.xlu0 %387 }
 0x372   :  { %4379 = vrcp.f32 %v388_v52  ;;  %v1505_v52 = vrot.slane %v4619_v12, %v1504_v51 }
 0x375   :  { %v560_v53 = vpop.xlane.xlu1 %559 }
 0x376   :  { %4381 = vrcp.f32 %v560_v53 }
 0x378   :  { %v4378_v54 = vpop.eup %4377 }
 0x379   :  { %v223_v55 = vmul.f32 %v4378_v54, %v4362_v21  ;;  %v732_v56 = vpop.xlane.xlu0 %731  ;;  %v1074_v63 = vpop.permute.xlu1 %1073 }
 0x37a   :  { %4383 = vrcp.f32 %v732_v56 }
 0x37b   :  { %4017 = vmatmul.mubr.msk.f32.vlgmr.msra.gmra.mrb[4].mxu1 %vm137_vm2, %v223_v55 }
 0x37c   :  { %v4380_v57 = vpop.eup %4379  ;;  %4025 = vmatpush3.msra.mxu1 %v4712_v1  ;;  %4026 = vmatprep.mubr.msk.f32.mxu1 %vm4517_vm1, %v4516_v8 }
 0x37d   :  { %v390_v17 = vmul.f32 %v4380_v57, %v4364_v23  ;;  %4034 = vmatprep.subr.mxu1 %v4516_v8  ;;  %v907_v62 = vpop.permute.xlu0 %906 }
 0x37f   :  { %4027 = vmatmul.mubr.msk.f32.vlgmr.msra.gmra.mrb[6].mxu1 %vm137_vm2, %v390_v17 }
 0x380   :  { %v4382_v58 = vpop.eup %4381  ;;  %4035 = vmatpush3.msra.mxu1 %v564_v50  ;;  %4036 = vmatprep.mubr.msk.f32.mxu1 %vm4517_vm1, %v4516_v8 }
 0x381   :  { %v562_v59 = vmul.f32 %v4382_v58, %v4366_v25  ;;  %4044 = vmatprep.subr.mxu1 %v4516_v8 }
 0x383   :  { %4037 = vmatmul.mubr.msk.f32.vlgmr.msra.gmra.mrb[8].mxu1 %vm137_vm2, %v562_v59 }
 0x384   :  { %v4384_v60 = vpop.eup %4383  ;;  %4045 = vmatpush3.msra.mxu1 %v736_v49  ;;  %4046 = vmatprep.mubr.msk.f32.mxu1 %vm4517_vm1, %v4516_v8 }
 0x385   :  { %v734_v61 = vmul.f32 %v4384_v60, %v4717_v27  ;;  %4054 = vmatprep.subr.mxu1 %v4516_v8 }
 0x387   :  { %4047 = vmatmul.mubr.msk.f32.vlgmr.msra.gmra.mrb[10].mxu1 %vm137_vm2, %v734_v61 }
 0x388   :  { %4055 = vmatpush3.msra.mxu1 %v907_v62  ;;  %4056 = vmatprep.mubr.msk.f32.mxu1 %vm4517_vm1, %v4516_v8 }
 0x389   :  { %4064 = vmatprep.subr.mxu1 %v4516_v8 }
 0x3aa   :  { %v903_v0 = vpop.xlane.xlu1 %902 }
 0x3ab   :  { %4385 = vrcp.f32 %v903_v0 }
 0x3ae   :  { %v1241_v1 = vpop.xlane.xlu1 %1240  ;;  %v1070_v2 = vpop.xlane.xlu0 %1069 }
 0x3af   :  { %4387 = vrcp.f32 %v1070_v2 }
 0x3b0   :  { %4389 = vrcp.f32 %v1241_v1 }
 0x3b2   :  { %v1412_v3 = vpop.xlane.xlu1 %1411  ;;  %v1245_v15 = vpop.permute.xlu0 %1244 }
 0x3b3   :  { %4391 = vrcp.f32 %v1412_v3 }
 0x3b5   :  { %v4386_v4 = vpop.eup %4385 }
 0x3b6   :  { %v905_v6 = vmul.f32 %v4386_v4, %v4370_v41  ;;  %v1416_v20 = vpop.permute.xlu1 %1415  ;;  %v1643_v4 = vld [vmem:[%s5200_s3] sm:$0xff] }
 0x3b8   :  { %4057 = vmatmul.mubr.msk.f32.vlgmr.msra.gmra.mrb[12].mxu1 %vm137_vm2, %v905_v6  ;;  %v1644_v6 = vld [vmem:[%s5200_s3 + $0x8] sm:$0xff] }
 0x3b9   :  { %4065 = vmatpush3.msra.mxu1 %v1074_v63  ;;  %4066 = vmatprep.mubr.msk.f32.mxu1 %vm4517_vm1, %v4516_v8  ;;  %v4388_v9 = vpop.eup %4387 }
 0x3ba   :  { %4074 = vmatprep.subr.mxu1 %v4516_v8  ;;  %v1072_v13 = vmul.f32 %v4388_v9, %v4725_v42  ;;  %v4390_v14 = vpop.eup %4389  ;;  %v1645_v9 = vld [vmem:[%s5200_s3 + $0x10] sm:$0xff] }
 0x3bb   :  { %v1243_v18 = vmul.f32 %v4390_v14, %v4728_v44  ;;  %v1646_v14 = vld [vmem:[%s5200_s3 + $0x18] sm:$0xff] }
 0x3bc   :  { %4067 = vmatmul.mubr.msk.f32.vlgmr.msra.gmra.mrb[14].mxu1 %vm137_vm2, %v1072_v13  ;;  %v4278_v13 = vpack.c.bf16 %v1644_v6, %v1643_v4 }
 0x3bd   :  { %4075 = vmatpush3.msra.mxu1 %v1245_v15  ;;  %4076 = vmatprep.mubr.msk.f32.mxu1 %vm4517_vm1, %v4516_v8  ;;  %v4392_v19 = vpop.eup %4391  ;;  %v4282_v15 = vpack.c.bf16 %v1646_v14, %v1645_v9 }
 0x3be   :  { %4084 = vmatprep.subr.mxu1 %v4516_v8  ;;  %v1414_v21 = vmul.f32 %v4392_v19, %v4734_v47  ;;  %v1735_v19 = vld [vmem:[%s5201_s4 + $0x8] sm:$0xff] }
 0x3c0   :  { %4077 = vmatmul.mubr.msk.f32.vlgmr.msra.gmra.mrb[16].mxu1 %vm137_vm2, %v1243_v18  ;;  %v1734_v18 = vld [vmem:[%s5201_s4] sm:$0xff] }
 0x3c1   :  { %4085 = vmatpush3.msra.mxu1 %v1416_v20  ;;  %4086 = vmatprep.mubr.msk.f32.mxu1 %vm4517_vm1, %v4516_v8  ;;  %v1736_v20 = vld [vmem:[%s5201_s4 + $0x10] sm:$0xff] }
 0x3c2   :  { %4279 = vmatprep.subr.bf16.mxu1 %v4278_v13 }
 0x3c4   :  { %4087 = vmatmul.mubr.msk.f32.vlgmr.msra.gmra.mrb[18].mxu1 %vm137_vm2, %v1414_v21  ;;  %v4286_v21 = vpack.c.bf16 %v1735_v19, %v1734_v18 }
 0x3c5   :  { %4281 = vmatpush3.bf16.msra.mxu1 %v4278_v13 }
 0x3c6   :  { %4283 = vmatprep.subr.bf16.mxu1 %v4282_v15  ;;  %4287 = vmatprep.subr.bf16.mxu0 %v4286_v21 }
 0x3c9   :  { %4285 = vmatpush3.bf16.msra.mxu1 %v4282_v15 }
 0x44e   :  { %v296_v22 = vpop.f32.mrb[4].mxu1 }
 0x44f   :  { %300 = vst.msk [vmem:[#allocation2] sm:$0xff] %vm137_vm2, %v296_v22  ;;  %v4018_v16 = vpop.f32.mrb[5].mxu1  ;;  %v1737_v22 = vld [vmem:[%s5201_s4 + $0x18] sm:$0xff] }
 0x450   :  { %v4290_v16 = vpack.c.bf16 %v1737_v22, %v1736_v20 }
 0x452   :  { %v463_v23 = vpop.f32.mrb[6].mxu1 }
 0x453   :  { %468 = vrot.lane.b32.xlu0 %v463_v23, %s4515_s12  ;;  %v4028_v24 = vpop.f32.mrb[7].mxu1  ;;  %v1738_v23 = vld [vmem:[%s5201_s4 + $0x20] sm:$0xff] }
 0x454   :  { %v1739_v24 = vld [vmem:[%s5201_s4 + $0x28] sm:$0xff] }
 0x456   :  { %v635_v25 = vpop.f32.mrb[8].mxu1 }
 0x457   :  { %640 = vrot.lane.b32.xlu1 %v635_v25, %s4529_s14  ;;  %v4038_v26 = vpop.f32.mrb[9].mxu1  ;;  %v4294_v25 = vpack.c.bf16 %v1739_v24, %v1738_v23 }
 0x45a   :  { %v807_v27 = vpop.f32.mrb[10].mxu1 }
 0x45b   :  { %812 = vrot.lane.b32.xlu1 %v807_v27, %s4530_s15  ;;  %v4048_v28 = vpop.f32.mrb[11].mxu1 }
 0x48b   :  { %v978_v31 = vpop.f32.mrb[12].mxu1 }
 0x48c   :  { %982 = vst.msk [vmem:[#allocation2 + $0x8] sm:$0xff] %vm137_vm2, %v978_v31  ;;  %v4058_v33 = vpop.f32.mrb[13].mxu1 }
 0x48f   :  { %v1145_v37 = vpop.f32.mrb[14].mxu1 }
 0x490   :  { %1150 = vrot.lane.b32.xlu0 %v1145_v37, %s4515_s12  ;;  %v4068_v38 = vpop.f32.mrb[15].mxu1 }
 0x493   :  { %v1316_v39 = vpop.f32.mrb[16].mxu1 }
 0x494   :  { %1321 = vrot.lane.b32.xlu0 %v1316_v39, %s4529_s14  ;;  %v4078_v40 = vpop.f32.mrb[17].mxu1 }
 0x495   :  { %v1627_v40 = vsub.s32 2, %v4609_v10 }
 0x497   :  { %v1487_v41 = vpop.f32.mrb[18].mxu1 }
 0x498   :  { %1492 = vrot.lane.b32.xlu1 %v1487_v41, %s4530_s15  ;;  %v4088_v42 = vpop.f32.mrb[19].mxu1 }
 0x4c5   :  { %v469_v43 = vpop.permute.xlu0 %468 }
 0x4c6   :  { %472 = vst.msk [vmem:[#allocation2] sm:$0xff] %vm471_vm3, %v469_v43  ;;  %v1628_v43 = vrot.slane %v4619_v12, %v1627_v40 }
 0x4c9   :  { %v641_v44 = vpop.permute.xlu1 %640 }
 0x4ca   :  { %644 = vst.msk [vmem:[#allocation2] sm:$0xff] %vm643_vm4, %v641_v44  ;;  %v1639_v44 = vsub.s32 3, %v4609_v10 }
 0x4cd   :  { %v813_v45 = vpop.permute.xlu1 %812 }
 0x4ce   :  { %816 = vst.msk [vmem:[#allocation2] sm:$0xff] %vm815_vm5, %v813_v45 }
 0x4d5   :  { %v1496_v46 = vld [vmem:[#allocation2] sm:$0xff] }
 0x4d6   :  { %4097 = vmatprep.mubr.msk.f32.mxu0 %vm52_vm0, %v1496_v46  ;;  %v1640_v46 = vrot.slane %v4619_v12, %v1639_v44 }
 0x502   :  { %v1151_v47 = vpop.permute.xlu0 %1150 }
 0x503   :  { %1153 = vst.msk [vmem:[#allocation2 + $0x8] sm:$0xff] %vm471_vm3, %v1151_v47 }
 0x506   :  { %v1322_v48 = vpop.permute.xlu0 %1321 }
 0x507   :  { %1324 = vst.msk [vmem:[#allocation2 + $0x8] sm:$0xff] %vm643_vm4, %v1322_v48 }
 0x50a   :  { %v1493_v49 = vpop.permute.xlu1 %1492 }
 0x50b   :  { %1495 = vst.msk [vmem:[#allocation2 + $0x8] sm:$0xff] %vm815_vm5, %v1493_v49 }
 0x512   :  { %v1497_v50 = vld [vmem:[#allocation2 + $0x8] sm:$0xff] }
 0x513   :  { %4098 = vmatmul.mubr.msk.f32.vlgmr.msra.gmra.mrb[14].mxu0 %vm52_vm0, %v1497_v50 }
 0x514   :  { %4289 = vmatpush3.bf16.msra.mxu0 %v4286_v21 }
 0x515   :  { %4291 = vmatprep.subr.bf16.mxu0 %v4290_v16 }
 0x518   :  { %4293 = vmatpush3.bf16.msra.mxu0 %v4290_v16 }
 0x519   :  { %4295 = vmatprep.subr.bf16.mxu0 %v4294_v25 }
 0x51c   :  { %4297 = vmatpush3.bf16.msra.mxu0 %v4294_v25 }
 0x5e6   :  { %v4099_v53 = vpop.f32.mrb[14].mxu0 }
 0x5e7   :  { %v1584_v54 = vadd.f32 %v4099_v53, %v1505_v52  ;;  %v1578_v55 = vpop.f32.mrb[15].mxu0 }
 0x5e8   :  { %v1579_v56 = vadd.f32 %v1578_v55, %v1505_v52  ;;  %v1740_v55 = vld [vmem:[%s5201_s4 + $0x30] sm:$0xff] }
 0x5e9   :  { %v1588_v57 = vadd.f32 %v1584_v54, %v4603_v7 }
 0x5ea   :  { %v1587_v17 = vadd.f32 %v1579_v56, %v4599_v5  ;;  %v1741_v56 = vld [vmem:[%s5201_s4 + $0x38] sm:$0xff] }
 0x5eb   :  { %v1592_v58 = vsel %vm52_vm0, %v1588_v57, 0.0 }
 0x5ec   :  { %1593 = vadd.xlane.f32.xlu1 %v1592_v58  ;;  %v1589_v59 = vsel %vm52_vm0, %v1587_v17, 0.0 }
 0x5ed   :  { %1590 = vadd.xlane.f32.xlu0 %v1589_v59 }
 0x679   :  { %v1594_v60 = vpop.xlane.xlu1 %1593 }
 0x67a   :  { %v1597_v61 = vmul.f32 0.03125, %v1594_v60  ;;  %v1591_v62 = vpop.xlane.xlu0 %1590 }
 0x67b   :  { %v1596_v63 = vmul.f32 0.03125, %v1591_v62 }
 0x67c   :  { %v4811_v0 = vsub.f32 %v1588_v57, %v1597_v61  ;;  %v4298_v57 = vpack.c.bf16 %v1741_v56, %v1740_v55 }
 0x67d   :  { %v1598_v1 = vsub.f32 %v1587_v17, %v1596_v63  ;;  %v1649_v17 = vsub.s32 4, %v4609_v10 }
 0x67e   :  { %v1601_v7 = vmul.f32 %v4811_v0, %v4811_v0  ;;  %v1630_v49 = vmul.f32 %v1628_v43, %v4811_v0  ;;  %4299 = vmatprep.subr.bf16.mxu0 %v4298_v57 }
 0x67f   :  { %v1600_v2 = vmul.f32 %v1598_v1, %v1598_v1  ;;  %v1629_v45 = vmul.f32 %v1628_v43, %v1598_v1  ;;  %4301 = vmatpush3.bf16.msra.mxu0 %v4298_v57  ;;  %v1650_v58 = vrot.slane %v4619_v12, %v1649_v17  ;;  %v1744_v1 = vsub.s32 5, %v4609_v10 }
 0x680   :  { %v1605_v5 = vsel %vm52_vm0, %v1601_v7, 0.0  ;;  %4151 = vmatprep.subr.mxu0 %v4516_v8 }
 0x681   :  { %v1602_v3 = vsel %vm52_vm0, %v1600_v2, 0.0  ;;  %v1745_v2 = vrot.slane %v4619_v12, %v1744_v1 }
 0x682   :  { %1603 = vadd.xlane.f32.xlu0 %v1602_v3 }
 0x686   :  { %1606 = vadd.xlane.f32.xlu0 %v1605_v5 }
 0x70f   :  { %v1604_v26 = vpop.xlane.xlu0 %1603 }
 0x710   :  { %v1609_v27 = vmul.f32 0.032258064, %v1604_v26  ;;  %v3824_v26 = vld [vmem:[%s5198_s1 + $0x20] sm:$0xff] }
 0x712   :  { %4393 = vrsqrt.f32 %v1609_v27  ;;  %vm1613_vm6 = vcmp.eq.f32.partialorder %v1609_v27, inf  ;;  %v1616_v32 = vand.u32 2147483648, %v1609_v27  ;;  %vm1615_vm7 = vcmp.eq.f32.partialorder %v1609_v27, 0.0 }
 0x713   :  { %v1607_v28 = vpop.xlane.xlu0 %1606 }
 0x714   :  { %v1610_v29 = vmul.f32 0.032258064, %v1607_v28  ;;  %v3826_v28 = vld [vmem:[%s5198_s1 + $0x30] sm:$0xff] }
 0x716   :  { %4395 = vrsqrt.f32 %v1610_v29  ;;  %vm1620_vm8 = vcmp.eq.f32.partialorder %v1610_v29, inf  ;;  %v1623_v38 = vand.u32 2147483648, %v1610_v29  ;;  %vm1622_vm9 = vcmp.eq.f32.partialorder %v1610_v29, 0.0 }
 0x71c   :  { %v4394_v30 = vpop.eup %4393 }
 0x71d   :  { %v1612_v31 = vmul.f32 %v4394_v30, %v1609_v27  ;;  %v3827_v30 = vld [vmem:[%s5198_s1 + $0x38] sm:$0xff] }
 0x71f   :  { %v1614_v33 = vsel %vm1613_vm6, %v1609_v27, %v1612_v31  ;;  %v3825_v27 = vld [vmem:[%s5198_s1 + $0x28] sm:$0xff]  ;;  %v4306_v31 = vpack.c.bf16 %v3827_v30, %v3826_v28 }
 0x720   :  { %v4396_v34 = vpop.eup %4395  ;;  %v1617_v35 = vsel %vm1615_vm7, %v1616_v32, %v1614_v33 }
 0x721   :  { %v1619_v36 = vmul.f32 %v4396_v34, %v1610_v29  ;;  %v1631_v37 = vadd.f32 1e-06, %v1617_v35 }
 0x723   :  { %v1621_v39 = vsel %vm1620_vm8, %v1610_v29, %v1619_v36  ;;  %4397 = vrcp.f32 %v1631_v37  ;;  %v4302_v29 = vpack.c.bf16 %v3825_v27, %v3824_v26 }
 0x724   :  { %v1624_v41 = vsel %vm1622_vm9, %v1623_v38, %v1621_v39 }
 0x725   :  { %v1632_v42 = vadd.f32 1e-06, %v1624_v41  ;;  %4303 = vmatprep.subr.bf16.mxu1 %v4302_v29 }
 0x727   :  { %4399 = vrcp.f32 %v1632_v42 }
 0x72d   :  { %v4398_v47 = vpop.eup %4397 }
 0x72e   :  { %v1634_v48 = vmul.f32 %v4398_v47, %v1629_v45 }
 0x730   :  { %v1641_v50 = vadd.f32 %v1640_v46, %v1634_v48 }
 0x731   :  { %v4400_v52 = vpop.eup %4399 }
 0x732   :  { %v1636_v53 = vmul.f32 %v4400_v52, %v1630_v49  ;;  %4108 = vmatprep.mubr.msk.f32.mxu1 %vm52_vm0, %v1641_v50 }
 0x734   :  { %v1642_v54 = vadd.f32 %v1640_v46, %v1636_v53  ;;  %v1878_v53 = vsub.s32 7, %v4609_v10 }
 0x736   :  { %4109 = vmatmul.mubr.msk.f32.vlgmr.msra.gmra.mrb[20].mxu1 %vm52_vm0, %v1642_v54  ;;  %v1879_v57 = vrot.slane %v4619_v12, %v1878_v53 }
 0x737   :  { %4305 = vmatpush3.bf16.msra.mxu1 %v4302_v29 }
 0x738   :  { %4307 = vmatprep.subr.bf16.mxu1 %v4306_v31 }
 0x73b   :  { %4309 = vmatpush3.bf16.msra.mxu1 %v4306_v31 }
 0x73c   :  { %4141 = vmatprep.subr.mxu1 %v4516_v8 }
 0x809   :  { %v4110_v59 = vpop.f32.mrb[20].mxu1 }
 0x80a   :  { %v1729_v60 = vadd.f32 %v4110_v59, %v1650_v58  ;;  %v1723_v61 = vpop.f32.mrb[21].mxu1 }
 0x80b   :  { %v1724_v62 = vadd.f32 %v1723_v61, %v1650_v58 }
 0x80c   :  { %v1733_v0 = vmax.f32 %v1729_v60, 0.0 }
 0x80d   :  { %v1732_v63 = vmax.f32 %v1724_v62, 0.0 }
 0x80f   :  { %4127 = vmatprep.mubr.msk.f32.mxu0 %vm1746_vm10, %v1732_v63 }
 0x810   :  { %4128 = vmatmul.mubr.msk.f32.vlgmr.msra.gmra.mrb[16].mxu0 %vm1746_vm10, %v1733_v0 }
 0x811   :  { %4153 = vmatprep.mubr.msk.f32.mxu0 %vm4517_vm1, %v4516_v8 }
 0x8e3   :  { %v4129_v3 = vpop.f32.mrb[16].mxu0 }
 0x8e4   :  { %v1825_v7 = vadd.f32 %v4129_v3, %v1745_v2  ;;  %v1819_v5 = vpop.f32.mrb[17].mxu0 }
 0x8e5   :  { %v1820_v4 = vadd.f32 %v1819_v5, %v1745_v2 }
 0x8e6   :  { %v1829_v6 = vadd.f32 %v1825_v7, %v1642_v54 }
 0x8e7   :  { %v1828_v9 = vadd.f32 %v1820_v4, %v1641_v50  ;;  %v1866_v50 = vsub.s32 6, %v4609_v10 }
 0x8e8   :  { %v1833_v13 = vsel %vm52_vm0, %v1829_v6, 0.0 }
 0x8e9   :  { %1834 = vadd.xlane.f32.xlu0 %v1833_v13  ;;  %v1830_v14 = vsel %vm52_vm0, %v1828_v9, 0.0  ;;  %v1867_v52 = vrot.slane %v4619_v12, %v1866_v50  ;;  %v4915_v12 = vld [vmem:[%s5202_s5 + $0x8] sm:$0xff] }
 0x8ea   :  { %1831 = vadd.xlane.f32.xlu1 %v1830_v14  ;;  %v1892_v63 = vrot.slane %v4915_v12, %v50_v11 }
 0x976   :  { %v1835_v15 = vpop.xlane.xlu0 %1834 }
 0x977   :  { %v1837_v18 = vmul.f32 0.03125, %v1835_v15  ;;  %v1832_v19 = vpop.xlane.xlu1 %1831 }
 0x978   :  { %v1836_v20 = vmul.f32 0.03125, %v1832_v19 }
 0x979   :  { %v1839_v21 = vsub.f32 %v1829_v6, %v1837_v18 }
 0x97a   :  { %v1838_v22 = vsub.f32 %v1828_v9, %v1836_v20 }
 0x97b   :  { %v1841_v16 = vmul.f32 %v1839_v21, %v1839_v21  ;;  %v1869_v54 = vmul.f32 %v1867_v52, %v1839_v21 }
 0x97c   :  { %v1840_v23 = vmul.f32 %v1838_v22, %v1838_v22  ;;  %v1868_v56 = vmul.f32 %v1867_v52, %v1838_v22 }
 0x97d   :  { %v1845_v24 = vsel %vm52_vm0, %v1841_v16, 0.0 }
 0x97e   :  { %1846 = vadd.xlane.f32.xlu0 %v1845_v24  ;;  %v1842_v25 = vsel %vm52_vm0, %v1840_v23, 0.0 }
 0x97f   :  { %1843 = vadd.xlane.f32.xlu1 %v1842_v25 }
 0xa0b   :  { %v1847_v32 = vpop.xlane.xlu0 %1846 }
 0xa0c   :  { %v1849_v33 = vmul.f32 0.032258064, %v1847_v32  ;;  %v1844_v34 = vpop.xlane.xlu1 %1843 }
 0xa0d   :  { %v1848_v35 = vmul.f32 0.032258064, %v1844_v34 }
 0xa0e   :  { %4401 = vrsqrt.f32 %v1849_v33  ;;  %vm1859_vm11 = vcmp.eq.f32.partialorder %v1849_v33, inf  ;;  %v1862_v39 = vand.u32 2147483648, %v1849_v33  ;;  %vm1861_vm12 = vcmp.eq.f32.partialorder %v1849_v33, 0.0 }
 0xa0f   :  { %4403 = vrsqrt.f32 %v1848_v35  ;;  %vm1852_vm13 = vcmp.eq.f32.partialorder %v1848_v35, inf  ;;  %v1855_v43 = vand.u32 2147483648, %v1848_v35  ;;  %vm1854_vm14 = vcmp.eq.f32.partialorder %v1848_v35, 0.0 }
 0xa18   :  { %v4402_v36 = vpop.eup %4401 }
 0xa19   :  { %v4404_v37 = vpop.eup %4403  ;;  %v1858_v38 = vmul.f32 %v4402_v36, %v1849_v33 }
 0xa1a   :  { %v1851_v41 = vmul.f32 %v4404_v37, %v1848_v35 }
 0xa1b   :  { %v1860_v42 = vsel %vm1859_vm11, %v1849_v33, %v1858_v38 }
 0xa1c   :  { %v1863_v45 = vsel %vm1861_vm12, %v1862_v39, %v1860_v42  ;;  %v1853_v46 = vsel %vm1852_vm13, %v1848_v35, %v1851_v41 }
 0xa1d   :  { %v1871_v47 = vadd.f32 1e-06, %v1863_v45  ;;  %v1856_v48 = vsel %vm1854_vm14, %v1855_v43, %v1853_v46 }
 0xa1e   :  { %v1870_v49 = vadd.f32 1e-06, %v1856_v48 }
 0xa1f   :  { %4405 = vrcp.f32 %v1871_v47 }
 0xa20   :  { %4407 = vrcp.f32 %v1870_v49 }
 0xa29   :  { %v4406_v55 = vpop.eup %4405 }
 0xa2a   :  { %v4408_v58 = vpop.eup %4407  ;;  %v1875_v59 = vmul.f32 %v4406_v55, %v1869_v54 }
 0xa2b   :  { %v1873_v60 = vmul.f32 %v4408_v58, %v1868_v56 }
 0xa2c   :  { %v4904_v62 = vadd.f32 %v1879_v57, %v1875_v59 }
 0xa2d   :  { %v4902_v61 = vadd.f32 %v1879_v57, %v1873_v60 }
 0xa2f   :  { %4138 = vmatprep.mubr.msk.f32.mxu1 %vm52_vm0, %v4902_v61 }
 0xa30   :  { %4139 = vmatmul.mubr.msk.f32.vlgmr.msra.gmra.mrb[22].mxu1 %vm52_vm0, %v4904_v62 }
 0xa31   :  { %4143 = vmatprep.mubr.msk.f32.mxu1 %vm4517_vm1, %v4516_v8 }
 0xb03   :  { %v4140_v0 = vpop.f32.mrb[22].mxu1 }
 0xb04   :  { %v1965_v2 = vpop.f32.mrb[23].mxu1  ;;  %v4934_v11 = vadd.f32 %v4140_v0, %v1892_v63 }
 0xb05   :  { %v4920_v3 = vadd.f32 %v1965_v2, %v1892_v63 }
 0xb07   :  { %2142 = vrot.lane.b32.xlu0 %v4920_v3, %s4521_s27  ;;  %1975 = vrot.lane.b32.xlu1 %v4920_v3, %s4519_s25 }
 0xb0b   :  { %2311 = vrot.lane.b32.xlu0 %v4920_v3, %s4523_s29  ;;  %2140 = vrot.lane.b32.xlu1 %v4920_v3, %s4518_s24 }
 0xb0f   :  { %2482 = vrot.lane.b32.xlu0 %v4920_v3, %s4524_s30  ;;  %2313 = vrot.lane.b32.xlu1 %v4920_v3, %s4520_s26 }
 0xb13   :  { %2821 = vrot.lane.b32.xlu0 %v4934_v11, %s4521_s27  ;;  %2484 = vrot.lane.b32.xlu1 %v4920_v3, %s4522_s28 }
 0xb17   :  { %2992 = vrot.lane.b32.xlu0 %v4934_v11, %s4520_s26  ;;  %2654 = vrot.lane.b32.xlu1 %v4934_v11, %s4519_s25 }
 0xb1b   :  { %3163 = vrot.lane.b32.xlu0 %v4934_v11, %s4522_s28  ;;  %2819 = vrot.lane.b32.xlu1 %v4934_v11, %s4518_s24 }
 0xb1f   :  { %2063 = vrot.lane.b32.xlu0 %v4920_v3, %s4526_s9  ;;  %2990 = vrot.lane.b32.xlu1 %v4934_v11, %s4523_s29 }
 0xb23   :  { %3161 = vrot.lane.b32.xlu1 %v4934_v11, %s4524_s30 }
 0xb27   :  { %2230 = vrot.lane.b32.xlu1 %v4920_v3, %s4525_s8 }
 0xb79   :  { %v2143_v7 = vpop.permute.xlu0 %2142  ;;  %v1976_v5 = vpop.permute.xlu1 %1975 }
 0xb7a   :  { %4142 = vmatpush3.xpose.msk.msra.mxu1 %vm137_vm2, %v1976_v5  ;;  %4152 = vmatpush3.xpose.msk.msra.mxu0 %vm137_vm2, %v2143_v7 }
 0xb7b   :  { %4161 = vmatprep.subr.mxu0 %v4516_v8  ;;  %4146 = vmatprep.subr.mxu1 %v4516_v8 }
 0xb7d   :  { %v2312_v4 = vpop.permute.xlu0 %2311  ;;  %4144 = vmatmul.mubr.msk.f32.vlgmr.msra.gmra.mrb[24].mxu1 %vm137_vm2, %v4920_v3  ;;  %v2141_v6 = vpop.permute.xlu1 %2140 }
 0xb7e   :  { %4154 = vmatmul.mubr.msk.f32.vlgmr.msra.gmra.mrb[18].mxu0 %vm137_vm2, %v2141_v6  ;;  %4148 = vmatprep.mubr.msk.f32.mxu1 %vm4517_vm1, %v4516_v8 }
 0xb7f   :  { %4163 = vmatprep.mubr.msk.f32.mxu0 %vm4517_vm1, %v4516_v8 }
 0xb81   :  { %v2483_v9 = vpop.permute.xlu0 %2482  ;;  %v2314_v13 = vpop.permute.xlu1 %2313 }
 0xb82   :  { %4162 = vmatpush3.xpose.msk.msra.mxu0 %vm137_vm2, %v2314_v13 }
 0xb83   :  { %4171 = vmatprep.subr.mxu0 %v4516_v8 }
 0xb85   :  { %v2822_v14 = vpop.permute.xlu0 %2821  ;;  %4164 = vmatmul.mubr.msk.f32.vlgmr.msra.gmra.mrb[20].mxu0 %vm137_vm2, %v2312_v4  ;;  %v2485_v15 = vpop.permute.xlu1 %2484 }
 0xb86   :  { %4172 = vmatpush3.xpose.msk.msra.mxu0 %vm137_vm2, %v2485_v15  ;;  %4173 = vmatprep.mubr.msk.f32.mxu0 %vm4517_vm1, %v4516_v8 }
 0xb87   :  { %4181 = vmatprep.subr.mxu0 %v4516_v8 }
 0xb89   :  { %v2993_v18 = vpop.permute.xlu0 %2992  ;;  %4174 = vmatmul.mubr.msk.f32.vlgmr.msra.gmra.mrb[22].mxu0 %vm137_vm2, %v2483_v9  ;;  %v2655_v19 = vpop.permute.xlu1 %2654 }
 0xb8a   :  { %4182 = vmatpush3.xpose.msk.msra.mxu0 %vm137_vm2, %v2655_v19  ;;  %4183 = vmatprep.mubr.msk.f32.mxu0 %vm4517_vm1, %v4516_v8 }
 0xb8b   :  { %4191 = vmatprep.subr.mxu0 %v4516_v8 }
 0xb8d   :  { %v3164_v20 = vpop.permute.xlu0 %3163  ;;  %4184 = vmatmul.mubr.msk.f32.vlgmr.msra.gmra.mrb[24].mxu0 %vm137_vm2, %v4934_v11  ;;  %v2820_v21 = vpop.permute.xlu1 %2819 }
 0xb8e   :  { %4192 = vmatpush3.xpose.msk.msra.mxu0 %vm137_vm2, %v2822_v14  ;;  %4193 = vmatprep.mubr.msk.f32.mxu0 %vm4517_vm1, %v4516_v8 }
 0xb8f   :  { %4201 = vmatprep.subr.mxu0 %v4516_v8 }
 0xb91   :  { %v2064_v22 = vpop.permute.xlu0 %2063  ;;  %4194 = vmatmul.mubr.msk.f32.vlgmr.msra.gmra.mrb[26].mxu0 %vm137_vm2, %v2820_v21  ;;  %v2991_v16 = vpop.permute.xlu1 %2990 }
 0xb92   :  { %4147 = vmatpush3.msra.mxu1 %v2064_v22  ;;  %4202 = vmatpush3.xpose.msk.msra.mxu0 %vm137_vm2, %v2993_v18 }
 0xb93   :  { %4203 = vmatprep.mubr.msk.f32.mxu0 %vm4517_vm1, %v4516_v8  ;;  %4211 = vmatprep.subr.mxu0 %v4516_v8 }
 0xb94   :  { %4156 = vmatprep.subr.mxu1 %v4516_v8 }
 0xb95   :  { %4204 = vmatmul.mubr.msk.f32.vlgmr.msra.gmra.mrb[28].mxu0 %vm137_vm2, %v2991_v16  ;;  %v3162_v23 = vpop.permute.xlu1 %3161 }
 0xb96   :  { %4212 = vmatpush3.xpose.msk.msra.mxu0 %vm137_vm2, %v3164_v20  ;;  %4213 = vmatprep.mubr.msk.f32.mxu0 %vm4517_vm1, %v4516_v8 }
 0xb99   :  { %4214 = vmatmul.mubr.msk.f32.vlgmr.msra.gmra.mrb[30].mxu0 %vm137_vm2, %v3162_v23  ;;  %v5008_v63 = vpop.permute.xlu1 %2230 }
 0xc50   :  { %v2047_v24 = vpop.f32.mrb[24].mxu1 }
 0xc51   :  { %v2051_v25 = vmul.f32 0.35355338, %v2047_v24  ;;  %v4145_v26 = vpop.f32.mrb[25].mxu1  ;;  %v2214_v27 = vpop.f32.mrb[18].mxu0 }
 0xc52   :  { %v2218_v28 = vmul.f32 0.35355338, %v2214_v27  ;;  %v4155_v29 = vpop.f32.mrb[19].mxu0 }
 0xc53   :  { %v2052_v30 = vsel %vm137_vm2, %v2051_v25, -inf }
 0xc54   :  { %2053 = vmax.xlane.f32.xlu0 %v2052_v30  ;;  %v2219_v31 = vsel %vm137_vm2, %v2218_v28, -inf }
 0xc55   :  { %2220 = vmax.xlane.f32.xlu1 %v2219_v31 }
 0xc58   :  { %v2385_v32 = vpop.f32.mrb[20].mxu0 }
 0xc59   :  { %v2389_v33 = vmul.f32 0.35355338, %v2385_v32  ;;  %v4165_v34 = vpop.f32.mrb[21].mxu0 }
 0xc5b   :  { %v2390_v35 = vsel %vm137_vm2, %v2389_v33, -inf }
 0xc5c   :  { %2391 = vmax.xlane.f32.xlu0 %v2390_v35  ;;  %v2556_v36 = vpop.f32.mrb[22].mxu0 }
 0xc5d   :  { %v2560_v37 = vmul.f32 0.35355338, %v2556_v36  ;;  %v4175_v38 = vpop.f32.mrb[23].mxu0 }
 0xc5f   :  { %v2561_v39 = vsel %vm137_vm2, %v2560_v37, -inf }
 0xc60   :  { %2562 = vmax.xlane.f32.xlu0 %v2561_v39  ;;  %v2726_v41 = vpop.f32.mrb[24].mxu0 }
 0xc61   :  { %v2730_v42 = vmul.f32 0.35355338, %v2726_v41  ;;  %v4185_v43 = vpop.f32.mrb[25].mxu0 }
 0xc63   :  { %v2731_v45 = vsel %vm137_vm2, %v2730_v42, -inf }
 0xc64   :  { %2732 = vmax.xlane.f32.xlu1 %v2731_v45  ;;  %v2893_v46 = vpop.f32.mrb[26].mxu0 }
 0xc65   :  { %v2897_v47 = vmul.f32 0.35355338, %v2893_v46  ;;  %v4195_v48 = vpop.f32.mrb[27].mxu0 }
 0xc67   :  { %v2898_v49 = vsel %vm137_vm2, %v2897_v47, -inf }
 0xc68   :  { %2899 = vmax.xlane.f32.xlu0 %v2898_v49  ;;  %v3064_v52 = vpop.f32.mrb[28].mxu0 }
 0xc69   :  { %v3068_v54 = vmul.f32 0.35355338, %v3064_v52  ;;  %v4205_v55 = vpop.f32.mrb[29].mxu0 }
 0xc6b   :  { %v3069_v56 = vsel %vm137_vm2, %v3068_v54, -inf }
 0xc6c   :  { %3070 = vmax.xlane.f32.xlu1 %v3069_v56  ;;  %v3235_v57 = vpop.f32.mrb[30].mxu0 }
 0xc6d   :  { %v3239_v58 = vmul.f32 0.35355338, %v3235_v57  ;;  %v4215_v59 = vpop.f32.mrb[31].mxu0 }
 0xc6f   :  { %v3240_v60 = vsel %vm137_vm2, %v3239_v58, -inf }
 0xc70   :  { %3241 = vmax.xlane.f32.xlu0 %v3240_v60 }
 0xc7d   :  { %2572 = vrot.lane.b32.xlu1 %v4920_v3, %s4527_s10 }
 0xc86   :  { %2401 = vrot.lane.b32.xlu0 %v4920_v3, %s4528_s13 }
 0xce1   :  { %v2054_v0 = vpop.xlane.xlu0 %2053 }
 0xce2   :  { %v2055_v2 = vsub.f32 %v2051_v25, %v2054_v0  ;;  %v2221_v7 = vpop.xlane.xlu1 %2220 }
 0xce3   :  { %v2222_v5 = vsub.f32 %v2218_v28, %v2221_v7 }
 0xce4   :  { %v2056_v4 = vmul.f32 1.442695, %v2055_v2 }
 0xce5   :  { %v2223_v6 = vmul.f32 1.442695, %v2222_v5 }
 0xce6   :  { %4409 = vpow2.f32 %v2056_v4 }
 0xce7   :  { %4411 = vpow2.f32 %v2223_v6 }
 0xce9   :  { %v2392_v9 = vpop.xlane.xlu0 %2391 }
 0xcea   :  { %v2393_v13 = vsub.f32 %v2389_v33, %v2392_v9 }
 0xcec   :  { %v2394_v14 = vmul.f32 1.442695, %v2393_v13 }
 0xced   :  { %v2563_v15 = vpop.xlane.xlu0 %2562 }
 0xcee   :  { %4413 = vpow2.f32 %v2394_v14  ;;  %v2564_v18 = vsub.f32 %v2560_v37, %v2563_v15 }
 0xcf0   :  { %v4410_v19 = vpop.eup %4409  ;;  %v2565_v20 = vmul.f32 1.442695, %v2564_v18 }
 0xcf1   :  { %v4412_v21 = vpop.eup %4411  ;;  %v2058_v3 = vsel %vm137_vm2, %v4410_v19, 0.0  ;;  %v2733_v26 = vpop.xlane.xlu1 %2732 }
 0xcf2   :  { %4415 = vpow2.f32 %v2565_v20  ;;  %2059 = vadd.xlane.f32.xlu1 %v2058_v3  ;;  %v2225_v22 = vsel %vm137_vm2, %v4412_v21, 0.0  ;;  %v2734_v27 = vsub.f32 %v2730_v42, %v2733_v26 }
 0xcf3   :  { %2226 = vadd.xlane.f32.xlu0 %v2225_v22 }
 0xcf4   :  { %v2735_v31 = vmul.f32 1.442695, %v2734_v27 }
 0xcf5   :  { %v2900_v28 = vpop.xlane.xlu0 %2899 }
 0xcf6   :  { %v2901_v30 = vsub.f32 %v2897_v47, %v2900_v28  ;;  %4417 = vpow2.f32 %v2735_v31  ;;  %v3854_v31 = vld [vmem:[%s5199_s2 + $0x20] sm:$0xff] }
 0xcf8   :  { %v4414_v16 = vpop.eup %4413  ;;  %v2902_v34 = vmul.f32 1.442695, %v2901_v30 }
 0xcf9   :  { %v2396_v23 = vsel %vm137_vm2, %v4414_v16, 0.0  ;;  %v3071_v29 = vpop.xlane.xlu1 %3070 }
 0xcfa   :  { %2397 = vadd.xlane.f32.xlu1 %v2396_v23  ;;  %v3072_v32 = vsub.f32 %v3068_v54, %v3071_v29  ;;  %4419 = vpow2.f32 %v2902_v34 }
 0xcfc   :  { %v5013_v24 = vpop.eup %4415  ;;  %v3073_v35 = vmul.f32 1.442695, %v3072_v32  ;;  %v3855_v32 = vld [vmem:[%s5199_s2 + $0x28] sm:$0xff] }
 0xcfd   :  { %v2567_v25 = vsel %vm137_vm2, %v5013_v24, 0.0  ;;  %v3242_v33 = vpop.xlane.xlu0 %3241  ;;  %v2573_v48 = vpop.permute.xlu1 %2572 }
 0xcfe   :  { %2568 = vadd.xlane.f32.xlu0 %v2567_v25  ;;  %v3243_v36 = vsub.f32 %v3239_v58, %v3242_v33  ;;  %4421 = vpow2.f32 %v3073_v35  ;;  %v4310_v33 = vpack.c.bf16 %v3855_v32, %v3854_v31  ;;  %v3856_v35 = vld [vmem:[%s5199_s2 + $0x30] sm:$0xff] }
 0xd00   :  { %v3244_v37 = vmul.f32 1.442695, %v3243_v36  ;;  %v4418_v38 = vpop.eup %4417  ;;  %v3857_v36 = vld [vmem:[%s5199_s2 + $0x38] sm:$0xff]  ;;  %4311 = vmatprep.subr.bf16.mxu0 %v4310_v33  ;;  %s4531_s2 = smov [#allocation6]  }
 0xd01   :  { %v2737_v41 = vsel %vm137_vm2, %v4418_v38, 0.0  ;;  %v2402_v49 = vpop.permute.xlu0 %2401  ;;  %4313 = vmatpush3.bf16.msra.mxu0 %v4310_v33 }
 0xd02   :  { %4423 = vpow2.f32 %v3244_v37 }
 0xd04   :  { %v5021_v39 = vpop.eup %4419 }
 0xd05   :  { %v2904_v43 = vsel %vm137_vm2, %v5021_v39, 0.0 }
 0xd08   :  { %v5024_v42 = vpop.eup %4421 }
 0xd09   :  { %v3075_v45 = vsel %vm137_vm2, %v5024_v42, 0.0 }
 0xd0b   :  { %2909 = vrot.lane.b32.xlu1 %v4934_v11, %s4525_s8  ;;  %s3779_s8 = sshll.u32 %s4531_s2, 4  ;;  %s3780_s8 = int_to_ptr.vmem [resolvable:$true] %s3779_s8 }
 0xd0c   :  { %v5030_v46 = vpop.eup %4423  ;;  %p4492_p9 = scmp.lt.s32.totalorder %s3780_s8, %s3780_s8 }
 0xd0d   :  { %v3246_v47 = vsel %vm137_vm2, %v5030_v46, 0.0 }
 0xd14   :  { %2742 = vrot.lane.b32.xlu0 %v4934_v11, %s4526_s9  ;;  %s4487_s9 = scalar_lea.vmem %s3780_s8, 256 }
 0xd15   :  { %p4488_p8 = scmp.ne.s32.totalorder %s3780_s8, %s4487_s9  ;;  %p4493_p10 = scmp.lt.s32.totalorder %s4487_s9, %s4487_s9 }
 0xd17   :  { %p4494_p11 = por %p4493_p10, %p4492_p9 }
 0xd19   :  { %p4495_p12 = pnand %p4494_p11, %p4488_p8 }
 0xd2f   :  { %2738 = vadd.xlane.f32.xlu1 %v2737_v41 }
 0xd33   :  { %2905 = vadd.xlane.f32.xlu0 %v2904_v43  ;;  %3076 = vadd.xlane.f32.xlu1 %v3075_v45 }
 0xd37   :  { %3247 = vadd.xlane.f32.xlu1 %v3246_v47 }
 0xd48   :  { %3251 = vrot.lane.b32.xlu1 %v4934_v11, %s4527_s10 }
 0xd49   :  { %3080 = vrot.lane.b32.xlu0 %v4934_v11, %s4528_s13 }
 0xd7f   :  { %v2060_v52 = vpop.xlane.xlu1 %2059 }
 0xd80   :  { %4425 = vrcp.f32 %v2060_v52  ;;  %v2227_v54 = vpop.xlane.xlu0 %2226 }
 0xd81   :  { %4427 = vrcp.f32 %v2227_v54 }
 0xd87   :  { %v2398_v55 = vpop.xlane.xlu1 %2397 }
 0xd88   :  { %4429 = vrcp.f32 %v2398_v55 }
 0xd8a   :  { %v4426_v56 = vpop.eup %4425 }
 0xd8b   :  { %v2062_v57 = vmul.f32 %v4426_v56, %v4410_v19  ;;  %v2569_v58 = vpop.xlane.xlu0 %2568  ;;  %v4428_v59 = vpop.eup %4427 }
 0xd8c   :  { %4431 = vrcp.f32 %v2569_v58  ;;  %v2229_v11 = vmul.f32 %v4428_v59, %v4412_v21  ;;  %v2910_v5 = vpop.permute.xlu1 %2909  ;;  %v3342_v58 = vrot.slane %v4915_v12, %v1504_v51 }
 0xd8d   :  { %4149 = vmatmul.mubr.msk.f32.vlgmr.msra.gmra.mrb[26].mxu1 %vm137_vm2, %v2062_v57 }
 0xd8e   :  { %4157 = vmatpush3.msra.mxu1 %v5008_v63  ;;  %4158 = vmatprep.mubr.msk.f32.mxu1 %vm4517_vm1, %v4516_v8 }
 0xd8f   :  { %4166 = vmatprep.subr.mxu1 %v4516_v8  ;;  %v2743_v7 = vpop.permute.xlu0 %2742 }
 0xd91   :  { %4159 = vmatmul.mubr.msk.f32.vlgmr.msra.gmra.mrb[28].mxu1 %vm137_vm2, %v2229_v11 }
 0xd92   :  { %v4430_v60 = vpop.eup %4429  ;;  %4167 = vmatpush3.msra.mxu1 %v2402_v49  ;;  %4168 = vmatprep.mubr.msk.f32.mxu1 %vm4517_vm1, %v4516_v8 }
 0xd93   :  { %v2400_v0 = vmul.f32 %v4430_v60, %v4414_v16  ;;  %4176 = vmatprep.subr.mxu1 %v4516_v8 }
 0xd95   :  { %4169 = vmatmul.mubr.msk.f32.vlgmr.msra.gmra.mrb[30].mxu1 %vm137_vm2, %v2400_v0 }
 0xd96   :  { %v4432_v2 = vpop.eup %4431  ;;  %4177 = vmatpush3.msra.mxu1 %v2573_v48  ;;  %4178 = vmatprep.mubr.msk.f32.mxu1 %vm4517_vm1, %v4516_v8 }
 0xd97   :  { %v2571_v63 = vmul.f32 %v4432_v2, %v5013_v24  ;;  %4186 = vmatprep.subr.mxu1 %v4516_v8 }
 0xd99   :  { %4179 = vmatmul.mubr.msk.f32.vlgmr.msra.gmra.mrb[32].mxu1 %vm137_vm2, %v2571_v63 }
 0xd9a   :  { %4187 = vmatpush3.msra.mxu1 %v2743_v7  ;;  %4188 = vmatprep.mubr.msk.f32.mxu1 %vm4517_vm1, %v4516_v8 }
 0xd9b   :  { %4196 = vmatprep.subr.mxu1 %v4516_v8 }
 0xdbc   :  { %v2739_v4 = vpop.xlane.xlu1 %2738 }
 0xdbd   :  { %4433 = vrcp.f32 %v2739_v4 }
 0xdc0   :  { %v2906_v6 = vpop.xlane.xlu0 %2905  ;;  %v3077_v9 = vpop.xlane.xlu1 %3076 }
 0xdc1   :  { %4435 = vrcp.f32 %v2906_v6 }
 0xdc2   :  { %4437 = vrcp.f32 %v3077_v9 }
 0xdc4   :  { %v3248_v13 = vpop.xlane.xlu1 %3247  ;;  %v3081_v21 = vpop.permute.xlu0 %3080 }
 0xdc5   :  { %4439 = vrcp.f32 %v3248_v13 }
 0xdc7   :  { %v4434_v14 = vpop.eup %4433 }
 0xdc8   :  { %v2741_v15 = vmul.f32 %v4434_v14, %v4418_v38  ;;  %v3252_v16 = vpop.permute.xlu1 %3251  ;;  %v4314_v38 = vpack.c.bf16 %v3857_v36, %v3856_v35 }
 0xdca   :  { %4189 = vmatmul.mubr.msk.f32.vlgmr.msra.gmra.mrb[34].mxu1 %vm137_vm2, %v2741_v15  ;;  %4315 = vmatprep.subr.bf16.mxu0 %v4314_v38 }
 0xdcb   :  { %v4436_v18 = vpop.eup %4435  ;;  %4197 = vmatpush3.msra.mxu1 %v2910_v5  ;;  %4198 = vmatprep.mubr.msk.f32.mxu1 %vm4517_vm1, %v4516_v8 }
 0xdcc   :  { %v2908_v19 = vmul.f32 %v4436_v18, %v5021_v39  ;;  %4206 = vmatprep.subr.mxu1 %v4516_v8  ;;  %v4438_v20 = vpop.eup %4437  ;;  %4317 = vmatpush3.bf16.msra.mxu0 %v4314_v38 }
 0xdcd   :  { %v3079_v3 = vmul.f32 %v4438_v20, %v5024_v42  ;;  %v3861_v20 = vld [vmem:[%s5200_s3 + $0x28] sm:$0xff] }
 0xdce   :  { %4199 = vmatmul.mubr.msk.f32.vlgmr.msra.gmra.mrb[36].mxu1 %vm137_vm2, %v2908_v19 }
 0xdcf   :  { %4207 = vmatpush3.msra.mxu1 %v3081_v21  ;;  %4208 = vmatprep.mubr.msk.f32.mxu1 %vm4517_vm1, %v4516_v8  ;;  %v4440_v22 = vpop.eup %4439  ;;  %v3862_v21 = vld [vmem:[%s5200_s3 + $0x30] sm:$0xff] }
 0xdd0   :  { %4216 = vmatprep.subr.mxu1 %v4516_v8  ;;  %v3250_v23 = vmul.f32 %v4440_v22, %v5030_v46  ;;  %v3863_v22 = vld [vmem:[%s5200_s3 + $0x38] sm:$0xff] }
 0xdd2   :  { %4209 = vmatmul.mubr.msk.f32.vlgmr.msra.gmra.mrb[38].mxu1 %vm137_vm2, %v3079_v3 }
 0xdd3   :  { %4217 = vmatpush3.msra.mxu1 %v3252_v16  ;;  %4218 = vmatprep.mubr.msk.f32.mxu1 %vm4517_vm1, %v4516_v8  ;;  %v4322_v16 = vpack.c.bf16 %v3863_v22, %v3862_v21 }
 0xdd6   :  { %4219 = vmatmul.mubr.msk.f32.vlgmr.msra.gmra.mrb[40].mxu1 %vm137_vm2, %v3250_v23  ;;  %v3866_v23 = vld [vmem:[%s5201_s4 + $0x40] sm:$0xff] }
 0xe60   :  { %v2135_v24 = vpop.f32.mrb[26].mxu1 }
 0xe61   :  { %2139 = vst.msk [vmem:[#allocation2] sm:$0xff] %vm137_vm2, %v2135_v24  ;;  %v4150_v25 = vpop.f32.mrb[27].mxu1  ;;  %v3867_v24 = vld [vmem:[%s5201_s4 + $0x48] sm:$0xff] }
 0xe62   :  { %v3868_v25 = vld [vmem:[%s5201_s4 + $0x50] sm:$0xff] }
 0xe64   :  { %v2302_v26 = vpop.f32.mrb[28].mxu1 }
 0xe65   :  { %2307 = vrot.lane.b32.xlu0 %v2302_v26, %s4515_s12  ;;  %v4160_v27 = vpop.f32.mrb[29].mxu1  ;;  %v4326_v26 = vpack.c.bf16 %v3867_v24, %v3866_v23 }
 0xe66   :  { %v3869_v27 = vld [vmem:[%s5201_s4 + $0x58] sm:$0xff] }
 0xe67   :  { %4327 = vmatprep.subr.bf16.mxu0 %v4326_v26 }
 0xe68   :  { %v2473_v28 = vpop.f32.mrb[30].mxu1 }
 0xe69   :  { %2478 = vrot.lane.b32.xlu1 %v2473_v28, %s4529_s14  ;;  %v4170_v29 = vpop.f32.mrb[31].mxu1  ;;  %v4330_v28 = vpack.c.bf16 %v3869_v27, %v3868_v25 }
 0xe6a   :  { %v3870_v29 = vld [vmem:[%s5201_s4 + $0x60] sm:$0xff] }
 0xe6c   :  { %v2644_v30 = vpop.f32.mrb[32].mxu1 }
 0xe6d   :  { %2649 = vrot.lane.b32.xlu1 %v2644_v30, %s4530_s15  ;;  %v4180_v8 = vpop.f32.mrb[33].mxu1  ;;  %v3871_v30 = vld [vmem:[%s5201_s4 + $0x68] sm:$0xff] }
 0xe6e   :  { %v4334_v8 = vpack.c.bf16 %v3871_v30, %v3870_v29 }
 0xe9d   :  { %v2814_v34 = vpop.f32.mrb[34].mxu1 }
 0xe9e   :  { %2818 = vst.msk [vmem:[#allocation2 + $0x8] sm:$0xff] %vm137_vm2, %v2814_v34  ;;  %v4190_v37 = vpop.f32.mrb[35].mxu1 }
 0xea1   :  { %v2981_v39 = vpop.f32.mrb[36].mxu1 }
 0xea2   :  { %2986 = vrot.lane.b32.xlu0 %v2981_v39, %s4515_s12  ;;  %v4200_v41 = vpop.f32.mrb[37].mxu1 }
 0xea5   :  { %v3152_v42 = vpop.f32.mrb[38].mxu1 }
 0xea6   :  { %3157 = vrot.lane.b32.xlu0 %v3152_v42, %s4529_s14  ;;  %v4210_v43 = vpop.f32.mrb[39].mxu1 }
 0xea9   :  { %v3323_v45 = vpop.f32.mrb[40].mxu1 }
 0xeaa   :  { %3328 = vrot.lane.b32.xlu1 %v3323_v45, %s4530_s15  ;;  %v4220_v46 = vpop.f32.mrb[41].mxu1 }
 0xed7   :  { %v2308_v47 = vpop.permute.xlu0 %2307 }
 0xed8   :  { %2310 = vst.msk [vmem:[#allocation2] sm:$0xff] %vm471_vm3, %v2308_v47 }
 0xedb   :  { %v2479_v48 = vpop.permute.xlu1 %2478 }
 0xedc   :  { %2481 = vst.msk [vmem:[#allocation2] sm:$0xff] %vm643_vm4, %v2479_v48 }
 0xedf   :  { %v2650_v49 = vpop.permute.xlu1 %2649 }
 0xee0   :  { %2652 = vst.msk [vmem:[#allocation2] sm:$0xff] %vm815_vm5, %v2650_v49  ;;  %v3463_v49 = vrot.slane %v4915_v12, %v1627_v40  ;;  %v3872_v40 = vld [vmem:[%s5201_s4 + $0x70] sm:$0xff] }
 0xee7   :  { %v3332_v52 = vld [vmem:[#allocation2] sm:$0xff] }
 0xee8   :  { %4229 = vmatprep.mubr.msk.f32.mxu0 %vm52_vm0, %v3332_v52 }
 0xf14   :  { %v2987_v54 = vpop.permute.xlu0 %2986 }
 0xf15   :  { %2989 = vst.msk [vmem:[#allocation2 + $0x8] sm:$0xff] %vm471_vm3, %v2987_v54  ;;  %v3475_v54 = vrot.slane %v4915_v12, %v1639_v44 }
 0xf18   :  { %v3158_v55 = vpop.permute.xlu0 %3157 }
 0xf19   :  { %3160 = vst.msk [vmem:[#allocation2 + $0x8] sm:$0xff] %vm643_vm4, %v3158_v55 }
 0xf1c   :  { %v3329_v56 = vpop.permute.xlu1 %3328 }
 0xf1d   :  { %3331 = vst.msk [vmem:[#allocation2 + $0x8] sm:$0xff] %vm815_vm5, %v3329_v56 }
 0xf24   :  { %v3333_v57 = vld [vmem:[#allocation2 + $0x8] sm:$0xff] }
 0xf25   :  { %4230 = vmatmul.mubr.msk.f32.vlgmr.msra.gmra.mrb[32].mxu0 %vm52_vm0, %v3333_v57 }
 0xf26   :  { %4329 = vmatpush3.bf16.msra.mxu0 %v4326_v26 }
 0xf27   :  { %4331 = vmatprep.subr.bf16.mxu0 %v4330_v28 }
 0xf2a   :  { %4333 = vmatpush3.bf16.msra.mxu0 %v4330_v28 }
 0xf2b   :  { %4335 = vmatprep.subr.bf16.mxu0 %v4334_v8 }
 0xf2e   :  { %4337 = vmatpush3.bf16.msra.mxu0 %v4334_v8 }
 0xff8   :  { %v4231_v59 = vpop.f32.mrb[32].mxu0 }
 0xff9   :  { %v3421_v11 = vadd.f32 %v4231_v59, %v3342_v58  ;;  %v3415_v60 = vpop.f32.mrb[33].mxu0 }
 0xffa   :  { %v3416_v0 = vadd.f32 %v3415_v60, %v3342_v58 }
 0xffb   :  { %v3425_v2 = vadd.f32 %v3421_v11, %v4904_v62 }
 0xffc   :  { %v3424_v63 = vadd.f32 %v3416_v0, %v4902_v61  ;;  %v3860_v61 = vld [vmem:[%s5200_s3 + $0x20] sm:$0xff]  ;;  %v3873_v0 = vld [vmem:[%s5201_s4 + $0x78] sm:$0xff] }
 0xffd   :  { %v3429_v7 = vsel %vm52_vm0, %v3425_v2, 0.0  ;;  %v4318_v3 = vpack.c.bf16 %v3861_v20, %v3860_v61  ;;  %v4338_v44 = vpack.c.bf16 %v3873_v0, %v3872_v40 }
 0xffe   :  { %3430 = vadd.xlane.f32.xlu1 %v3429_v7  ;;  %v3426_v5 = vsel %vm52_vm0, %v3424_v63, 0.0 }
 0xfff   :  { %3427 = vadd.xlane.f32.xlu0 %v3426_v5  ;;  %4319 = vmatprep.subr.bf16.mxu1 %v4318_v3 }
0x1000   :  { %4321 = vmatpush3.bf16.msra.mxu1 %v4318_v3  ;;  %4339 = vmatprep.subr.bf16.mxu0 %v4338_v44 }
0x1001   :  { %4323 = vmatprep.subr.bf16.mxu1 %v4322_v16  ;;  %4341 = vmatpush3.bf16.msra.mxu0 %v4338_v44 }
0x1004   :  { %4325 = vmatpush3.bf16.msra.mxu1 %v4322_v16 }
0x108b   :  { %v3431_v4 = vpop.xlane.xlu1 %3430 }
0x108c   :  { %v3433_v6 = vmul.f32 0.03125, %v3431_v4  ;;  %v3428_v9 = vpop.xlane.xlu0 %3427 }
0x108d   :  { %v3432_v13 = vmul.f32 0.03125, %v3428_v9 }
0x108e   :  { %v3435_v14 = vsub.f32 %v3425_v2, %v3433_v6  ;;  %v3486_v2 = vrot.slane %v4915_v12, %v1649_v17 }
0x108f   :  { %v3434_v51 = vsub.f32 %v3424_v63, %v3432_v13  ;;  %v3582_v13 = vrot.slane %v4915_v12, %v1744_v1 }
0x1090   :  { %v3437_v19 = vmul.f32 %v3435_v14, %v3435_v14  ;;  %v3465_v57 = vmul.f32 %v3463_v49, %v3435_v14 }
0x1091   :  { %v3436_v15 = vmul.f32 %v3434_v51, %v3434_v51  ;;  %v3464_v52 = vmul.f32 %v3463_v49, %v3434_v51 }
0x1092   :  { %v3441_v62 = vsel %vm52_vm0, %v3437_v19, 0.0 }
0x1093   :  { %v3438_v18 = vsel %vm52_vm0, %v3436_v15, 0.0 }
0x1094   :  { %3439 = vadd.xlane.f32.xlu0 %v3438_v18 }
0x1098   :  { %3442 = vadd.xlane.f32.xlu0 %v3441_v62 }
0x1121   :  { %v3440_v31 = vpop.xlane.xlu0 %3439 }
0x1122   :  { %v3444_v32 = vmul.f32 0.032258064, %v3440_v31 }
0x1124   :  { %4441 = vrsqrt.f32 %v3444_v32  ;;  %vm3448_vm15 = vcmp.eq.f32.partialorder %v3444_v32, inf  ;;  %v3451_v37 = vand.u32 2147483648, %v3444_v32  ;;  %vm3450_vm1 = vcmp.eq.f32.partialorder %v3444_v32, 0.0 }
0x1125   :  { %v3443_v33 = vpop.xlane.xlu0 %3442 }
0x1126   :  { %v3445_v34 = vmul.f32 0.032258064, %v3443_v33 }
0x1128   :  { %4443 = vrsqrt.f32 %v3445_v34  ;;  %vm3455_vm2 = vcmp.eq.f32.partialorder %v3445_v34, inf  ;;  %v3458_v45 = vand.u32 2147483648, %v3445_v34  ;;  %vm3457_vm3 = vcmp.eq.f32.partialorder %v3445_v34, 0.0 }
0x112e   :  { %v4442_v35 = vpop.eup %4441 }
0x112f   :  { %v3447_v36 = vmul.f32 %v4442_v35, %v3444_v32 }
0x1131   :  { %v3449_v38 = vsel %vm3448_vm15, %v3444_v32, %v3447_v36 }
0x1132   :  { %v4444_v39 = vpop.eup %4443  ;;  %v3452_v41 = vsel %vm3450_vm1, %v3451_v37, %v3449_v38 }
0x1133   :  { %v3454_v42 = vmul.f32 %v4444_v39, %v3445_v34  ;;  %v3466_v43 = vadd.f32 1e-06, %v3452_v41 }
0x1135   :  { %v3456_v46 = vsel %vm3455_vm2, %v3445_v34, %v3454_v42  ;;  %4445 = vrcp.f32 %v3466_v43  ;;  %v3703_v43 = vrot.slane %v4915_v12, %v1866_v50 }
0x1136   :  { %v3459_v47 = vsel %vm3457_vm3, %v3458_v45, %v3456_v46  ;;  %v3715_v46 = vrot.slane %v4915_v12, %v1878_v53 }
0x1137   :  { %v3467_v48 = vadd.f32 1e-06, %v3459_v47 }
0x1139   :  { %4447 = vrcp.f32 %v3467_v48 }
0x113f   :  { %v4446_v55 = vpop.eup %4445 }
0x1140   :  { %v3469_v56 = vmul.f32 %v4446_v55, %v3464_v52 }
0x1142   :  { %v3476_v58 = vadd.f32 %v3475_v54, %v3469_v56 }
0x1143   :  { %v4448_v59 = vpop.eup %4447 }
0x1144   :  { %v3471_v11 = vmul.f32 %v4448_v59, %v3465_v57  ;;  %4240 = vmatprep.mubr.msk.f32.mxu1 %vm52_vm0, %v3476_v58 }
0x1146   :  { %v3477_v60 = vadd.f32 %v3475_v54, %v3471_v11 }
0x1148   :  { %4241 = vmatmul.mubr.msk.f32.vlgmr.msra.gmra.mrb[42].mxu1 %vm52_vm0, %v3477_v60 }
0x121b   :  { %v4242_v63 = vpop.f32.mrb[42].mxu1 }
0x121c   :  { %v3565_v7 = vadd.f32 %v4242_v63, %v3486_v2  ;;  %v3559_v5 = vpop.f32.mrb[43].mxu1 }
0x121d   :  { %v3560_v4 = vadd.f32 %v3559_v5, %v3486_v2 }
0x121e   :  { %v3569_v9 = vmax.f32 %v3565_v7, 0.0 }
0x121f   :  { %v3568_v6 = vmax.f32 %v3560_v4, 0.0 }
0x1221   :  { %4259 = vmatprep.mubr.msk.f32.mxu0 %vm1746_vm10, %v3568_v6 }
0x1222   :  { %4260 = vmatmul.mubr.msk.f32.vlgmr.msra.gmra.mrb[34].mxu0 %vm1746_vm10, %v3569_v9 }
0x12f5   :  { %v4261_v14 = vpop.f32.mrb[34].mxu0 }
0x12f6   :  { %v3661_v51 = vadd.f32 %v4261_v14, %v3582_v13  ;;  %v3655_v15 = vpop.f32.mrb[35].mxu0 }
0x12f7   :  { %v3656_v18 = vadd.f32 %v3655_v15, %v3582_v13 }
0x12f8   :  { %v3665_v19 = vadd.f32 %v3661_v51, %v3477_v60 }
0x12f9   :  { %v3664_v17 = vadd.f32 %v3656_v18, %v3476_v58 }
0x12fa   :  { %v3669_v62 = vsel %vm52_vm0, %v3665_v19, 0.0 }
0x12fb   :  { %3670 = vadd.xlane.f32.xlu0 %v3669_v62  ;;  %v3666_v61 = vsel %vm52_vm0, %v3664_v17, 0.0 }
0x12fc   :  { %3667 = vadd.xlane.f32.xlu1 %v3666_v61 }
0x1388   :  { %v3671_v20 = vpop.xlane.xlu0 %3670 }
0x1389   :  { %v3673_v21 = vmul.f32 0.03125, %v3671_v20  ;;  %v3668_v3 = vpop.xlane.xlu1 %3667  ;;  %v3876_v20 = vld [vmem:[%s5203_s6] ss:$0 sm:$0xff] }
0x138a   :  { %v3672_v22 = vmul.f32 0.03125, %v3668_v3 }
0x138b   :  { %v3675_v16 = vsub.f32 %v3665_v19, %v3673_v21 }
0x138c   :  { %v3674_v23 = vsub.f32 %v3664_v17, %v3672_v22 }
0x138d   :  { %v3677_v24 = vmul.f32 %v3675_v16, %v3675_v16  ;;  %v3705_v45 = vmul.f32 %v3703_v43, %v3675_v16  ;;  %v3877_v16 = vld [vmem:[%s5203_s6 + $0x1] ss:$0 sm:$0xff] }
0x138e   :  { %v3676_v1 = vmul.f32 %v3674_v23, %v3674_v23  ;;  %v3704_v48 = vmul.f32 %v3703_v43, %v3674_v23 }
0x138f   :  { %v3681_v25 = vsel %vm52_vm0, %v3677_v24, 0.0 }
0x1390   :  { %3682 = vadd.xlane.f32.xlu0 %v3681_v25  ;;  %v3678_v26 = vsel %vm52_vm0, %v3676_v1, 0.0 }
0x1391   :  { %3679 = vadd.xlane.f32.xlu1 %v3678_v26 }
0x141d   :  { %v3683_v27 = vpop.xlane.xlu0 %3682 }
0x141e   :  { %v3685_v28 = vmul.f32 0.032258064, %v3683_v27  ;;  %v3680_v29 = vpop.xlane.xlu1 %3679 }
0x141f   :  { %v3684_v30 = vmul.f32 0.032258064, %v3680_v29 }
0x1420   :  { %4449 = vrsqrt.f32 %v3685_v28  ;;  %vm3695_vm4 = vcmp.eq.f32.partialorder %v3685_v28, inf  ;;  %v3698_v33 = vand.u32 2147483648, %v3685_v28  ;;  %vm3697_vm5 = vcmp.eq.f32.partialorder %v3685_v28, 0.0 }
0x1421   :  { %4451 = vrsqrt.f32 %v3684_v30  ;;  %vm3688_vm6 = vcmp.eq.f32.partialorder %v3684_v30, inf  ;;  %v3691_v36 = vand.u32 2147483648, %v3684_v30  ;;  %vm3690_vm7 = vcmp.eq.f32.partialorder %v3684_v30, 0.0 }
0x142a   :  { %v4450_v8 = vpop.eup %4449 }
0x142b   :  { %v4452_v31 = vpop.eup %4451  ;;  %v3694_v32 = vmul.f32 %v4450_v8, %v3685_v28 }
0x142c   :  { %v3687_v34 = vmul.f32 %v4452_v31, %v3684_v30 }
0x142d   :  { %v3696_v35 = vsel %vm3695_vm4, %v3685_v28, %v3694_v32 }
0x142e   :  { %v3689_v37 = vsel %vm3688_vm6, %v3684_v30, %v3687_v34  ;;  %v3699_v38 = vsel %vm3697_vm5, %v3698_v33, %v3696_v35 }
0x142f   :  { %v3707_v39 = vadd.f32 1e-06, %v3699_v38  ;;  %v3692_v41 = vsel %vm3690_vm7, %v3691_v36, %v3689_v37 }
0x1430   :  { %v3706_v42 = vadd.f32 1e-06, %v3692_v41 }
0x1431   :  { %4453 = vrcp.f32 %v3707_v39 }
0x1432   :  { %4455 = vrcp.f32 %v3706_v42 }
0x143b   :  { %v4454_v47 = vpop.eup %4453 }
0x143c   :  { %v4456_v49 = vpop.eup %4455  ;;  %v3711_v52 = vmul.f32 %v4454_v47, %v3705_v45 }
0x143d   :  { %v3709_v54 = vmul.f32 %v4456_v49, %v3704_v48 }
0x143e   :  { %v3717_v55 = vadd.f32 %v3715_v46, %v3711_v52 }
0x143f   :  { %v3716_v56 = vadd.f32 %v3715_v46, %v3709_v54 }
0x1440   :  { %v3723_v57 = vsel %vm52_vm0, %v3717_v55, 0.0 }
0x1441   :  { %3724 = vadd.xlane.f32.xlu0 %v3723_v57  ;;  %v3720_v58 = vsel %vm52_vm0, %v3716_v56, 0.0 }
0x1442   :  { %3721 = vadd.xlane.f32.xlu1 %v3720_v58 }
0x14ce   :  { %v3725_v59 = vpop.xlane.xlu0 %3724 }
0x14cf   :  { %v3727_v50 = vmul.f32 0.03125, %v3725_v59  ;;  %v3722_v11 = vpop.xlane.xlu1 %3721 }
0x14d0   :  { %v3726_v60 = vmul.f32 0.03125, %v3722_v11 }
0x14d1   :  { %v3729_v10 = vsub.f32 %v3717_v55, %v3727_v50 }
0x14d2   :  { %v3728_v40 = vsub.f32 %v3716_v56, %v3726_v60 }
0x14d3   :  { %v3731_v53 = vmul.f32 %v3729_v10, %v3729_v10  ;;  %v3759_v21 = vmul.f32 %v3876_v20, %v3729_v10 }
0x14d4   :  { %v3730_v12 = vmul.f32 %v3728_v40, %v3728_v40  ;;  %v3758_v22 = vmul.f32 %v3876_v20, %v3728_v40 }
0x14d5   :  { %v3735_v0 = vsel %vm52_vm0, %v3731_v53, 0.0 }
0x14d6   :  { %3736 = vadd.xlane.f32.xlu0 %v3735_v0  ;;  %v3732_v44 = vsel %vm52_vm0, %v3730_v12, 0.0 }
0x14d7   :  { %3733 = vadd.xlane.f32.xlu1 %v3732_v44 }
0x1563   :  { %v3737_v2 = vpop.xlane.xlu0 %3736 }
0x1564   :  { %v3739_v63 = vmul.f32 0.032258064, %v3737_v2  ;;  %v3734_v7 = vpop.xlane.xlu1 %3733 }
0x1565   :  { %v3738_v5 = vmul.f32 0.032258064, %v3734_v7 }
0x1566   :  { %4457 = vrsqrt.f32 %v3739_v63  ;;  %vm3749_vm8 = vcmp.eq.f32.partialorder %v3739_v63, inf  ;;  %v3752_v13 = vand.u32 2147483648, %v3739_v63  ;;  %vm3751_vm9 = vcmp.eq.f32.partialorder %v3739_v63, 0.0 }
0x1567   :  { %4459 = vrsqrt.f32 %v3738_v5  ;;  %vm3742_vm10 = vcmp.eq.f32.partialorder %v3738_v5, inf  ;;  %v3745_v15 = vand.u32 2147483648, %v3738_v5  ;;  %vm3744_vm11 = vcmp.eq.f32.partialorder %v3738_v5, 0.0 }
0x1570   :  { %v4458_v4 = vpop.eup %4457 }
0x1571   :  { %v4460_v6 = vpop.eup %4459  ;;  %v3748_v9 = vmul.f32 %v4458_v4, %v3739_v63 }
0x1572   :  { %v3741_v14 = vmul.f32 %v4460_v6, %v3738_v5 }
0x1573   :  { %v3750_v51 = vsel %vm3749_vm8, %v3739_v63, %v3748_v9 }
0x1574   :  { %v3753_v18 = vsel %vm3751_vm9, %v3752_v13, %v3750_v51  ;;  %v3743_v19 = vsel %vm3742_vm10, %v3738_v5, %v3741_v14 }
0x1575   :  { %v3761_v17 = vadd.f32 1e-06, %v3753_v18  ;;  %v3746_v62 = vsel %vm3744_vm11, %v3745_v15, %v3743_v19 }
0x1576   :  { %v3760_v61 = vadd.f32 1e-06, %v3746_v62 }
0x1577   :  { %4461 = vrcp.f32 %v3761_v17 }
0x1578   :  { %4463 = vrcp.f32 %v3760_v61 }
0x1581   :  { %v4462_v3 = vpop.eup %4461 }
0x1582   :  { %v4464_v23 = vpop.eup %4463  ;;  %v3765_v24 = vmul.f32 %v4462_v3, %v3759_v21 }
0x1583   :  { %v3763_v1 = vmul.f32 %v4464_v23, %v3758_v22 }
0x1584   :  { %v3771_v25 = vadd.f32 %v3877_v16, %v3765_v24 }
0x1585   :  { %v3770_v26 = vadd.f32 %v3877_v16, %v3763_v1 }
0x1586   :  { %3773 = vst.msk [vmem:[#allocation6 + $0x8] sm:$0xff] %vm52_vm0, %v3771_v25 }
0x1587   :  { %3772 = vst.msk [vmem:[#allocation6] sm:$0xff] %vm52_vm0, %v3770_v26 }
0x1588   :  { %4498 = shalt.err (!%p4495_p12)
}
0x1589   :  { %s4499_s13 = scalar_lea.hbm %s5204_s7, 256 }
0x158a   :  { %p4500_p13 = scmp.ne.s32.totalorder %s5204_s7, %s4499_s13  ;;  %p4503_p0 = scmp.lt.u32.totalorder %s4499_s13, %s5204_s7 }
0x158c   :  { %p4505_p1 = pnand %p4503_p0, %p4500_p13 }
0x158e   :  { %4508 = shalt.err (!%p4505_p1)
}
0x158f   :  { %s5206_s20 = smov 128  }
0x1590   :  { %3785 = dma.vmem_to_hbm [thread:$0]  %s3780_s8, 256, %s5204_s7, [#allocation5], %s5206_s20, %s5206_s20, %s4515_s12  }
0x1591   :  { %4511 = dma.done.wait [#allocation5], 256  }
0x1592   :  { %4512 = vsyncadd [#allocation5], 4294967040 }
0x1593   :  { %3789 = vsyncpa [#allocation4], 1 }
0x1594   :  { %3790 = vsyncpa [#allocation5], 1 }

</bundles_post_ra>
